<compile_context>
chip_gen: v6e
topology: v6e:2x2x1
jax: 0.10.0
libtpu: 0.0.40
codegen_flags: <defaults>
</compile_context>

<pallas_src>
import functools
import math

import jax
import jax.numpy as jnp
from jax import lax
from jax.experimental import pallas as pl
from jax.experimental.pallas import tpu as pltpu

# ---------------- small synthetic T5 config (args.latent_size -> d_model) ----
VOCAB = 128
D_MODEL = 32          # hidden_size / latent_size
N_HEADS = 4
D_KV = 8              # inner_dim = N_HEADS * D_KV = D_MODEL
INNER = N_HEADS * D_KV
D_FF = 64
N_LAYERS = 2
REL_BUCKETS = 32
REL_MAX_DIST = 128
EPS = 1e-6
NEG_INF = -1e9


def _rms_norm(x, w):
    # T5LayerNorm: no mean subtraction, no bias.
    var = jnp.mean(x * x, axis=-1, keepdims=True)
    return x * lax.rsqrt(var + EPS) * w


# ---------------- fused full-stack kernel (no grid, static layer loop) -------
def _t5_stack_kernel(hidden_ref, bias_ref, wqkv_ref, wo_ref, wi_ref, wo_ff_ref,
                     ln1_ref, ln2_ref, final_ln_ref, out_ref, *, batch, seq):
    bs = batch * seq
    hidden = hidden_ref[...]                        # (B*S, D) f32 residual stream
    bias = bias_ref[...]                            # (H*B, S, S) f32, mask folded in

    # Static unroll over layers: single basic block, all weights VMEM-resident.
    for l in range(N_LAYERS):
        # ---------------- self-attention (pre-LN, residual) ----------------
        normed = _rms_norm(hidden, ln1_ref[l]).astype(jnp.bfloat16)       # (BS, D)

        # Q/K/V for every (q|k|v, head) group in ONE batched einsum; the group
        # dimension is a major axis (weight layout (3H, D, Dk)), so q/k/v and
        # head selection are leading-dim indices — no lane-dim slicing.
        normed_g = jnp.broadcast_to(normed[None], (3 * N_HEADS, bs, D_MODEL))
        qkv = jnp.einsum('gnd,gdk->gnk', normed_g, wqkv_ref[l],
                         preferred_element_type=jnp.float32)              # (3H, BS, Dk)
        q = qkv[0:N_HEADS].reshape(N_HEADS * batch, seq, D_KV)            # leading-dim
        k = qkv[N_HEADS:2 * N_HEADS].reshape(N_HEADS * batch, seq, D_KV)  # reshapes only
        v = qkv[2 * N_HEADS:3 * N_HEADS].reshape(N_HEADS * batch, seq, D_KV)

        # All heads and batch rows at once: one score einsum, one fused
        # bias+mask add, one softmax, one context einsum.
        # (T5 does NOT scale scores by 1/sqrt(d_kv).)
        s = jnp.einsum('gqd,gkd->gqk', q.astype(jnp.bfloat16),
                       k.astype(jnp.bfloat16),
                       preferred_element_type=jnp.float32) + bias         # (H*B, S, S)
        s = s - jnp.max(s, axis=-1, keepdims=True)
        p = jnp.exp(s)
        # approx reciprocal runs on the EUP slot; deviation from exact divide
        # is tiny relative to the bf16 matmul rounding already present.
        p = p * pl.reciprocal(jnp.sum(p, axis=-1, keepdims=True), approx=True)
        ctx = jnp.einsum('gqk,gkd->gqd', p.astype(jnp.bfloat16),
                         v.astype(jnp.bfloat16),
                         preferred_element_type=jnp.float32)              # (H*B, S, Dk)

        # Batched per-head output projection (single einsum), then a tiny
        # static reduction over the H leading slices.
        ctx = ctx.reshape(N_HEADS, bs, D_KV).astype(jnp.bfloat16)         # (H, BS, Dk)
        proj = jnp.einsum('hnd,hdm->hnm', ctx, wo_ref[l],
                          preferred_element_type=jnp.float32)             # (H, BS, D)
        attn = proj[0]
        for h in range(1, N_HEADS):
            attn = attn + proj[h]
        hidden = hidden + attn

        # ---------------- ReLU feed-forward (pre-LN, residual) -------------
        normed2 = _rms_norm(hidden, ln2_ref[l]).astype(jnp.bfloat16)
        hmid = jnp.maximum(
            jnp.dot(normed2, wi_ref[l], preferred_element_type=jnp.float32), 0.0)
        ff = jnp.dot(hmid.astype(jnp.bfloat16), wo_ff_ref[l],
                     preferred_element_type=jnp.float32)
        hidden = hidden + ff

    out_ref[...] = _rms_norm(hidden, final_ln_ref[...])


def t5_encoder_pallas(params, hidden, att_mask, pos_bias):
    B, S, _ = hidden.shape
    BS = B * S

    # Fold the padding mask into the (layer-shared) relative-position bias ONCE
    # on the wrapper side; groups are ordered head-major / batch-minor to match
    # the kernel's (h, b) attention grouping.
    neg = (1.0 - att_mask.astype(jnp.float32)) * NEG_INF            # (B, S)
    bias = pos_bias[:, None, :, :] + neg[None, :, None, :]          # (H, B, S, S)
    bias = bias.reshape(N_HEADS * B, S, S).astype(jnp.float32)

    kernel = functools.partial(_t5_stack_kernel, batch=B, seq=S)
    vmem = lambda: pl.BlockSpec(memory_space=pltpu.MemorySpace.VMEM)
    out = pl.pallas_call(
        kernel,
        out_shape=jax.ShapeDtypeStruct((BS, D_MODEL), jnp.float32),
        in_specs=[vmem() for _ in range(9)],     # whole arrays, VMEM-resident
        out_specs=vmem(),
        compiler_params=pltpu.CompilerParams(
            vmem_limit_bytes=32 * 1024 * 1024),  # explicit; footprint here ~40 KB
    )(hidden.reshape(BS, D_MODEL).astype(jnp.float32),
      bias,
      params["wqkv"], params["wo"], params["wi"], params["wo_ff"],
      params["ln1"], params["ln2"], params["final_ln"])
    return out.reshape(B, S, D_MODEL)


# ---------------- T5 glue (bucket math / embedding gather: host-side) --------
def _relative_position_bucket(relative_position,
                              num_buckets=REL_BUCKETS,
                              max_distance=REL_MAX_DIST):
    # Bidirectional (encoder) variant of HF T5Attention._relative_position_bucket
    num_buckets //= 2
    relative_buckets = (relative_position > 0).astype(jnp.int32) * num_buckets
    relative_position = jnp.abs(relative_position)
    max_exact = num_buckets // 2
    is_small = relative_position < max_exact
    rel_f = jnp.maximum(relative_position, 1).astype(jnp.float32)
    rel_if_large = max_exact + (
        jnp.log(rel_f / max_exact) / math.log(max_distance / max_exact)
        * (num_buckets - max_exact)
    ).astype(jnp.int32)
    rel_if_large = jnp.minimum(rel_if_large, num_buckets - 1)
    relative_buckets = relative_buckets + jnp.where(
        is_small, relative_position, rel_if_large)
    return relative_buckets


def compute_position_bias(rel_table, seq_len):
    ctx = jnp.arange(seq_len)[:, None]
    mem = jnp.arange(seq_len)[None, :]
    buckets = _relative_position_bucket(mem - ctx)      # (S, S)
    values = rel_table[buckets]                         # (S, S, H) gather (glue)
    return jnp.transpose(values, (2, 0, 1))             # (H, S, S)


# ---------------- parameters ---------------------------------------------------
def init_params(key):
    std = 0.02
    keys = list(jax.random.split(key, 2 + 6 * N_LAYERS))

    def nxt():
        return keys.pop(0)

    def heads_major(w):  # (D, H*Dk) -> (H, D, Dk): head on a MAJOR axis
        return jnp.transpose(w.reshape(D_MODEL, N_HEADS, D_KV), (1, 0, 2))

    params = {
        "embed": jax.random.normal(nxt(), (VOCAB, D_MODEL), jnp.float32) * std,
        "rel_bias": jax.random.normal(nxt(), (REL_BUCKETS, N_HEADS),
                                      jnp.float32) * std,
        "final_ln": jnp.ones((1, D_MODEL), jnp.float32),
    }
    wqkv, wo, wi, wo_ff, ln1, ln2 = [], [], [], [], [], []
    for _ in range(N_LAYERS):
        wq = jax.random.normal(nxt(), (D_MODEL, INNER), jnp.float32) * std
        wk = jax.random.normal(nxt(), (D_MODEL, INNER), jnp.float32) * std
        wv = jax.random.normal(nxt(), (D_MODEL, INNER), jnp.float32) * std
        wqkv.append(jnp.concatenate(
            [heads_major(wq), heads_major(wk), heads_major(wv)], axis=0))   # (3H, D, Dk)
        wo.append((jax.random.normal(nxt(), (INNER, D_MODEL), jnp.float32) * std)
                  .reshape(N_HEADS, D_KV, D_MODEL))                         # (H, Dk, D)
        wi.append(jax.random.normal(nxt(), (D_MODEL, D_FF), jnp.float32) * std)
        wo_ff.append(jax.random.normal(nxt(), (D_FF, D_MODEL), jnp.float32) * std)
        ln1.append(jnp.ones((1, D_MODEL), jnp.float32))
        ln2.append(jnp.ones((1, D_MODEL), jnp.float32))
    # matmul weights are stored bf16 (MXU-native); accumulation stays f32.
    params["wqkv"] = jnp.stack(wqkv).astype(jnp.bfloat16)     # (L, 3H, D, Dk)
    params["wo"] = jnp.stack(wo).astype(jnp.bfloat16)         # (L, H, Dk, D)
    params["wi"] = jnp.stack(wi).astype(jnp.bfloat16)         # (L, D, D_FF)
    params["wo_ff"] = jnp.stack(wo_ff).astype(jnp.bfloat16)   # (L, D_FF, D)
    params["ln1"] = jnp.stack(ln1)                            # (L, 1, D) f32
    params["ln2"] = jnp.stack(ln2)                            # (L, 1, D) f32
    return params


# ---------------- forward (T5Decoder.forward equivalent) -----------------------
def t5_decoder_forward(params, input_ids_t5, att_msk_t5):
    B, S = input_ids_t5.shape
    hidden = params["embed"][input_ids_t5]                    # (B, S, D) gather (glue)
    # shared relative position bias (HF computes it in layer 0, reuses it)
    pos_bias = compute_position_bias(params["rel_bias"], S)   # (H, S, S)
    return t5_encoder_pallas(params, hidden, att_msk_t5, pos_bias)


# ---------------- demo ----------------------------------------------------------
if __name__ == "__main__":
    key = jax.random.PRNGKey(0)
    pkey, ikey = jax.random.split(key)
    params = init_params(pkey)

    B, S = 2, 8
    input_ids_t5 = jax.random.randint(ikey, (B, S), 0, VOCAB, dtype=jnp.int32)
    att_msk_t5 = jnp.array([[1, 1, 1, 1, 1, 1, 1, 1],
                            [1, 1, 1, 1, 1, 1, 0, 0]], dtype=jnp.int32)

    fwd = jax.jit(t5_decoder_forward)
    out = fwd(params, input_ids_t5, att_msk_t5)
    out = jax.block_until_ready(out)

    assert out.shape == (B, S, D_MODEL), out.shape
    assert bool(jnp.all(jnp.isfinite(out)))
    print("KERNEL_OK")
</pallas_src>

<mosaic_0001>
module attributes {stable_mosaic.version = 11 : i64} {
  func.func @_t5_stack_kernel(%arg0: memref<16x32xf32, #tpu.memory_space<vmem>>, %arg1: memref<8x8x8xf32, #tpu.memory_space<vmem>>, %arg2: memref<2x12x32x8xbf16, #tpu.memory_space<vmem>>, %arg3: memref<2x4x8x32xbf16, #tpu.memory_space<vmem>>, %arg4: memref<2x32x64xbf16, #tpu.memory_space<vmem>>, %arg5: memref<2x64x32xbf16, #tpu.memory_space<vmem>>, %arg6: memref<2x1x32xf32, #tpu.memory_space<vmem>>, %arg7: memref<2x1x32xf32, #tpu.memory_space<vmem>>, %arg8: memref<1x32xf32, #tpu.memory_space<vmem>>, %arg9: memref<16x32xf32, #tpu.memory_space<vmem>>) attributes {dimension_semantics = [], scalar_prefetch = 0 : i64, scratch_operands = 0 : i64, tpu.core_type = #tpu.core_type<tc>} {
    %c0 = arith.constant 0 : index
    %c0_0 = arith.constant 0 : index
    %0 = vector.load %arg0[%c0, %c0_0] : memref<16x32xf32, #tpu.memory_space<vmem>>, vector<16x32xf32>
    %c0_1 = arith.constant 0 : index
    %c0_2 = arith.constant 0 : index
    %c0_3 = arith.constant 0 : index
    %1 = vector.load %arg1[%c0_1, %c0_2, %c0_3] : memref<8x8x8xf32, #tpu.memory_space<vmem>>, vector<8x8x8xf32>
    %c0_4 = arith.constant 0 : index
    %c0_5 = arith.constant 0 : index
    %c0_6 = arith.constant 0 : index
    %2 = vector.load %arg6[%c0_4, %c0_5, %c0_6] : memref<2x1x32xf32, #tpu.memory_space<vmem>>, vector<1x1x32xf32>
    %3 = vector.shape_cast %2 : vector<1x1x32xf32> to vector<1x32xf32>
    %4 = arith.mulf %0, %0 : vector<16x32xf32>
    %cst = arith.constant dense<0.000000e+00> : vector<16xf32>
    %5 = vector.multi_reduction <add>, %4, %cst [1] : vector<16x32xf32> to vector<16xf32>
    %6 = vector.shape_cast %5 : vector<16xf32> to vector<16x1xf32>
    %cst_7 = arith.constant 3.200000e+01 : f32
    %7 = vector.broadcast %cst_7 : f32 to vector<16x1xf32>
    %8 = arith.divf %6, %7 : vector<16x1xf32>
    %cst_8 = arith.constant 9.99999997E-7 : f32
    %9 = vector.broadcast %cst_8 : f32 to vector<16x1xf32>
    %10 = arith.addf %8, %9 : vector<16x1xf32>
    %11 = math.rsqrt %10 : vector<16x1xf32>
    %12 = vector.broadcast %11 : vector<16x1xf32> to vector<16x32xf32>
    %13 = arith.mulf %0, %12 : vector<16x32xf32>
    %14 = vector.broadcast %3 : vector<1x32xf32> to vector<16x32xf32>
    %15 = arith.mulf %13, %14 : vector<16x32xf32>
    %16 = arith.truncf %15 : vector<16x32xf32> to vector<16x32xbf16>
    %17 = vector.shape_cast %16 : vector<16x32xbf16> to vector<1x16x32xbf16>
    %18 = vector.shape_cast %17 : vector<1x16x32xbf16> to vector<1x16x32xbf16>
    %19 = vector.broadcast %18 : vector<1x16x32xbf16> to vector<12x16x32xbf16>
    %c0_9 = arith.constant 0 : index
    %c0_10 = arith.constant 0 : index
    %c0_11 = arith.constant 0 : index
    %c0_12 = arith.constant 0 : index
    %20 = vector.load %arg2[%c0_9, %c0_10, %c0_11, %c0_12] : memref<2x12x32x8xbf16, #tpu.memory_space<vmem>>, vector<1x12x32x8xbf16>
    %21 = vector.shape_cast %20 : vector<1x12x32x8xbf16> to vector<12x32x8xbf16>
    "tpu.trace_start"() <{level = 10 : i32, message = "gnd,gdk->gnk"}> : () -> ()
    %cst_13 = arith.constant dense<0.000000e+00> : vector<12x16x8xf32>
    %22 = tpu.matmul %19, %21, %cst_13 {dimension_numbers = #tpu.dot_dimension_numbers<[2], [1], [1], [2], [0, 0, 0, 1, 1, 2], [0], [0]>} : vector<12x16x32xbf16>, vector<12x32x8xbf16>, vector<12x16x8xf32> -> vector<12x16x8xf32>
    "tpu.trace_stop"() : () -> ()
    %23 = vector.extract_strided_slice %22 {offsets = [0, 0, 0], sizes = [4, 16, 8], strides = [1, 1, 1]} : vector<12x16x8xf32> to vector<4x16x8xf32>
    %24 = vector.shape_cast %23 : vector<4x16x8xf32> to vector<8x8x8xf32>
    %25 = vector.extract_strided_slice %22 {offsets = [4, 0, 0], sizes = [4, 16, 8], strides = [1, 1, 1]} : vector<12x16x8xf32> to vector<4x16x8xf32>
    %26 = vector.shape_cast %25 : vector<4x16x8xf32> to vector<8x8x8xf32>
    %27 = vector.extract_strided_slice %22 {offsets = [8, 0, 0], sizes = [4, 16, 8], strides = [1, 1, 1]} : vector<12x16x8xf32> to vector<4x16x8xf32>
    %28 = vector.shape_cast %27 : vector<4x16x8xf32> to vector<8x8x8xf32>
    %29 = arith.truncf %24 : vector<8x8x8xf32> to vector<8x8x8xbf16>
    %30 = arith.truncf %26 : vector<8x8x8xf32> to vector<8x8x8xbf16>
    "tpu.trace_start"() <{level = 10 : i32, message = "gqd,gkd->gqk"}> : () -> ()
    %cst_14 = arith.constant dense<0.000000e+00> : vector<8x8x8xf32>
    %31 = tpu.matmul %29, %30, %cst_14 {dimension_numbers = #tpu.dot_dimension_numbers<[2], [2], [1], [1], [0, 0, 0, 1, 1, 1], [0], [0]>} : vector<8x8x8xbf16>, vector<8x8x8xbf16>, vector<8x8x8xf32> -> vector<8x8x8xf32>
    "tpu.trace_stop"() : () -> ()
    %32 = arith.addf %31, %1 : vector<8x8x8xf32>
    %cst_15 = arith.constant dense<0xFF800000> : vector<8x8xf32>
    %33 = vector.multi_reduction <maximumf>, %32, %cst_15 [2] : vector<8x8x8xf32> to vector<8x8xf32>
    %34 = vector.shape_cast %33 : vector<8x8xf32> to vector<8x8x1xf32>
    %35 = vector.broadcast %34 : vector<8x8x1xf32> to vector<8x8x8xf32>
    %36 = arith.subf %32, %35 : vector<8x8x8xf32>
    %37 = math.exp %36 : vector<8x8x8xf32>
    %cst_16 = arith.constant dense<0.000000e+00> : vector<8x8xf32>
    %38 = vector.multi_reduction <add>, %37, %cst_16 [2] : vector<8x8x8xf32> to vector<8x8xf32>
    %39 = vector.shape_cast %38 : vector<8x8xf32> to vector<8x8x1xf32>
    %40 = tpu.reciprocal %39 {approx = true} : vector<8x8x1xf32> -> vector<8x8x1xf32>
    %41 = vector.broadcast %40 : vector<8x8x1xf32> to vector<8x8x8xf32>
    %42 = arith.mulf %37, %41 : vector<8x8x8xf32>
    %43 = arith.truncf %42 : vector<8x8x8xf32> to vector<8x8x8xbf16>
    %44 = arith.truncf %28 : vector<8x8x8xf32> to vector<8x8x8xbf16>
    "tpu.trace_start"() <{level = 10 : i32, message = "gqk,gkd->gqd"}> : () -> ()
    %cst_17 = arith.constant dense<0.000000e+00> : vector<8x8x8xf32>
    %45 = tpu.matmul %43, %44, %cst_17 {dimension_numbers = #tpu.dot_dimension_numbers<[2], [1], [1], [2], [0, 0, 0, 1, 1, 2], [0], [0]>} : vector<8x8x8xbf16>, vector<8x8x8xbf16>, vector<8x8x8xf32> -> vector<8x8x8xf32>
    "tpu.trace_stop"() : () -> ()
    %46 = vector.shape_cast %45 : vector<8x8x8xf32> to vector<4x16x8xf32>
    %47 = arith.truncf %46 : vector<4x16x8xf32> to vector<4x16x8xbf16>
    %c0_18 = arith.constant 0 : index
    %c0_19 = arith.constant 0 : index
    %c0_20 = arith.constant 0 : index
    %c0_21 = arith.constant 0 : index
    %48 = vector.load %arg3[%c0_18, %c0_19, %c0_20, %c0_21] : memref<2x4x8x32xbf16, #tpu.memory_space<vmem>>, vector<1x4x8x32xbf16>
    %49 = vector.shape_cast %48 : vector<1x4x8x32xbf16> to vector<4x8x32xbf16>
    "tpu.trace_start"() <{level = 10 : i32, message = "hnd,hdm->hnm"}> : () -> ()
    %cst_22 = arith.constant dense<0.000000e+00> : vector<4x16x32xf32>
    %50 = tpu.matmul %47, %49, %cst_22 {dimension_numbers = #tpu.dot_dimension_numbers<[2], [1], [1], [2], [0, 0, 0, 1, 1, 2], [0], [0]>} : vector<4x16x8xbf16>, vector<4x8x32xbf16>, vector<4x16x32xf32> -> vector<4x16x32xf32>
    "tpu.trace_stop"() : () -> ()
    %51 = vector.extract_strided_slice %50 {offsets = [0, 0, 0], sizes = [1, 16, 32], strides = [1, 1, 1]} : vector<4x16x32xf32> to vector<1x16x32xf32>
    %52 = vector.shape_cast %51 : vector<1x16x32xf32> to vector<16x32xf32>
    %53 = vector.extract_strided_slice %50 {offsets = [1, 0, 0], sizes = [1, 16, 32], strides = [1, 1, 1]} : vector<4x16x32xf32> to vector<1x16x32xf32>
    %54 = vector.shape_cast %53 : vector<1x16x32xf32> to vector<16x32xf32>
    %55 = arith.addf %52, %54 : vector<16x32xf32>
    %56 = vector.extract_strided_slice %50 {offsets = [2, 0, 0], sizes = [1, 16, 32], strides = [1, 1, 1]} : vector<4x16x32xf32> to vector<1x16x32xf32>
    %57 = vector.shape_cast %56 : vector<1x16x32xf32> to vector<16x32xf32>
    %58 = arith.addf %55, %57 : vector<16x32xf32>
    %59 = vector.extract_strided_slice %50 {offsets = [3, 0, 0], sizes = [1, 16, 32], strides = [1, 1, 1]} : vector<4x16x32xf32> to vector<1x16x32xf32>
    %60 = vector.shape_cast %59 : vector<1x16x32xf32> to vector<16x32xf32>
    %61 = arith.addf %58, %60 : vector<16x32xf32>
    %62 = arith.addf %0, %61 : vector<16x32xf32>
    %c0_23 = arith.constant 0 : index
    %c0_24 = arith.constant 0 : index
    %c0_25 = arith.constant 0 : index
    %63 = vector.load %arg7[%c0_23, %c0_24, %c0_25] : memref<2x1x32xf32, #tpu.memory_space<vmem>>, vector<1x1x32xf32>
    %64 = vector.shape_cast %63 : vector<1x1x32xf32> to vector<1x32xf32>
    %65 = arith.mulf %62, %62 : vector<16x32xf32>
    %cst_26 = arith.constant dense<0.000000e+00> : vector<16xf32>
    %66 = vector.multi_reduction <add>, %65, %cst_26 [1] : vector<16x32xf32> to vector<16xf32>
    %67 = vector.shape_cast %66 : vector<16xf32> to vector<16x1xf32>
    %cst_27 = arith.constant 3.200000e+01 : f32
    %68 = vector.broadcast %cst_27 : f32 to vector<16x1xf32>
    %69 = arith.divf %67, %68 : vector<16x1xf32>
    %cst_28 = arith.constant 9.99999997E-7 : f32
    %70 = vector.broadcast %cst_28 : f32 to vector<16x1xf32>
    %71 = arith.addf %69, %70 : vector<16x1xf32>
    %72 = math.rsqrt %71 : vector<16x1xf32>
    %73 = vector.broadcast %72 : vector<16x1xf32> to vector<16x32xf32>
    %74 = arith.mulf %62, %73 : vector<16x32xf32>
    %75 = vector.broadcast %64 : vector<1x32xf32> to vector<16x32xf32>
    %76 = arith.mulf %74, %75 : vector<16x32xf32>
    %77 = arith.truncf %76 : vector<16x32xf32> to vector<16x32xbf16>
    %c0_29 = arith.constant 0 : index
    %c0_30 = arith.constant 0 : index
    %c0_31 = arith.constant 0 : index
    %78 = vector.load %arg4[%c0_29, %c0_30, %c0_31] : memref<2x32x64xbf16, #tpu.memory_space<vmem>>, vector<1x32x64xbf16>
    %79 = vector.shape_cast %78 : vector<1x32x64xbf16> to vector<32x64xbf16>
    %cst_32 = arith.constant dense<0.000000e+00> : vector<16x64xf32>
    %80 = tpu.matmul %77, %79, %cst_32 {dimension_numbers = #tpu.dot_dimension_numbers<[1], [0], [0], [1], [0, 0, 1, 1], [], []>} : vector<16x32xbf16>, vector<32x64xbf16>, vector<16x64xf32> -> vector<16x64xf32>
    %cst_33 = arith.constant 0.000000e+00 : f32
    %81 = vector.broadcast %cst_33 : f32 to vector<16x64xf32>
    %82 = arith.maximumf %80, %81 : vector<16x64xf32>
    %83 = arith.truncf %82 : vector<16x64xf32> to vector<16x64xbf16>
    %c0_34 = arith.constant 0 : index
    %c0_35 = arith.constant 0 : index
    %c0_36 = arith.constant 0 : index
    %84 = vector.load %arg5[%c0_34, %c0_35, %c0_36] : memref<2x64x32xbf16, #tpu.memory_space<vmem>>, vector<1x64x32xbf16>
    %85 = vector.shape_cast %84 : vector<1x64x32xbf16> to vector<64x32xbf16>
    %cst_37 = arith.constant dense<0.000000e+00> : vector<16x32xf32>
    %86 = tpu.matmul %83, %85, %cst_37 {dimension_numbers = #tpu.dot_dimension_numbers<[1], [0], [0], [1], [0, 0, 1, 1], [], []>} : vector<16x64xbf16>, vector<64x32xbf16>, vector<16x32xf32> -> vector<16x32xf32>
    %87 = arith.addf %62, %86 : vector<16x32xf32>
    %c1 = arith.constant 1 : index
    %c0_38 = arith.constant 0 : index
    %c0_39 = arith.constant 0 : index
    %88 = vector.load %arg6[%c1, %c0_38, %c0_39] : memref<2x1x32xf32, #tpu.memory_space<vmem>>, vector<1x1x32xf32>
    %89 = vector.shape_cast %88 : vector<1x1x32xf32> to vector<1x32xf32>
    %90 = arith.mulf %87, %87 : vector<16x32xf32>
    %cst_40 = arith.constant dense<0.000000e+00> : vector<16xf32>
    %91 = vector.multi_reduction <add>, %90, %cst_40 [1] : vector<16x32xf32> to vector<16xf32>
    %92 = vector.shape_cast %91 : vector<16xf32> to vector<16x1xf32>
    %cst_41 = arith.constant 3.200000e+01 : f32
    %93 = vector.broadcast %cst_41 : f32 to vector<16x1xf32>
    %94 = arith.divf %92, %93 : vector<16x1xf32>
    %cst_42 = arith.constant 9.99999997E-7 : f32
    %95 = vector.broadcast %cst_42 : f32 to vector<16x1xf32>
    %96 = arith.addf %94, %95 : vector<16x1xf32>
    %97 = math.rsqrt %96 : vector<16x1xf32>
    %98 = vector.broadcast %97 : vector<16x1xf32> to vector<16x32xf32>
    %99 = arith.mulf %87, %98 : vector<16x32xf32>
    %100 = vector.broadcast %89 : vector<1x32xf32> to vector<16x32xf32>
    %101 = arith.mulf %99, %100 : vector<16x32xf32>
    %102 = arith.truncf %101 : vector<16x32xf32> to vector<16x32xbf16>
    %103 = vector.shape_cast %102 : vector<16x32xbf16> to vector<1x16x32xbf16>
    %104 = vector.shape_cast %103 : vector<1x16x32xbf16> to vector<1x16x32xbf16>
    %105 = vector.broadcast %104 : vector<1x16x32xbf16> to vector<12x16x32xbf16>
    %c1_43 = arith.constant 1 : index
    %c0_44 = arith.constant 0 : index
    %c0_45 = arith.constant 0 : index
    %c0_46 = arith.constant 0 : index
    %106 = vector.load %arg2[%c1_43, %c0_44, %c0_45, %c0_46] : memref<2x12x32x8xbf16, #tpu.memory_space<vmem>>, vector<1x12x32x8xbf16>
    %107 = vector.shape_cast %106 : vector<1x12x32x8xbf16> to vector<12x32x8xbf16>
    "tpu.trace_start"() <{level = 10 : i32, message = "gnd,gdk->gnk"}> : () -> ()
    %cst_47 = arith.constant dense<0.000000e+00> : vector<12x16x8xf32>
    %108 = tpu.matmul %105, %107, %cst_47 {dimension_numbers = #tpu.dot_dimension_numbers<[2], [1], [1], [2], [0, 0, 0, 1, 1, 2], [0], [0]>} : vector<12x16x32xbf16>, vector<12x32x8xbf16>, vector<12x16x8xf32> -> vector<12x16x8xf32>
    "tpu.trace_stop"() : () -> ()
    %109 = vector.extract_strided_slice %108 {offsets = [0, 0, 0], sizes = [4, 16, 8], strides = [1, 1, 1]} : vector<12x16x8xf32> to vector<4x16x8xf32>
    %110 = vector.shape_cast %109 : vector<4x16x8xf32> to vector<8x8x8xf32>
    %111 = vector.extract_strided_slice %108 {offsets = [4, 0, 0], sizes = [4, 16, 8], strides = [1, 1, 1]} : vector<12x16x8xf32> to vector<4x16x8xf32>
    %112 = vector.shape_cast %111 : vector<4x16x8xf32> to vector<8x8x8xf32>
    %113 = vector.extract_strided_slice %108 {offsets = [8, 0, 0], sizes = [4, 16, 8], strides = [1, 1, 1]} : vector<12x16x8xf32> to vector<4x16x8xf32>
    %114 = vector.shape_cast %113 : vector<4x16x8xf32> to vector<8x8x8xf32>
    %115 = arith.truncf %110 : vector<8x8x8xf32> to vector<8x8x8xbf16>
    %116 = arith.truncf %112 : vector<8x8x8xf32> to vector<8x8x8xbf16>
    "tpu.trace_start"() <{level = 10 : i32, message = "gqd,gkd->gqk"}> : () -> ()
    %cst_48 = arith.constant dense<0.000000e+00> : vector<8x8x8xf32>
    %117 = tpu.matmul %115, %116, %cst_48 {dimension_numbers = #tpu.dot_dimension_numbers<[2], [2], [1], [1], [0, 0, 0, 1, 1, 1], [0], [0]>} : vector<8x8x8xbf16>, vector<8x8x8xbf16>, vector<8x8x8xf32> -> vector<8x8x8xf32>
    "tpu.trace_stop"() : () -> ()
    %118 = arith.addf %117, %1 : vector<8x8x8xf32>
    %cst_49 = arith.constant dense<0xFF800000> : vector<8x8xf32>
    %119 = vector.multi_reduction <maximumf>, %118, %cst_49 [2] : vector<8x8x8xf32> to vector<8x8xf32>
    %120 = vector.shape_cast %119 : vector<8x8xf32> to vector<8x8x1xf32>
    %121 = vector.broadcast %120 : vector<8x8x1xf32> to vector<8x8x8xf32>
    %122 = arith.subf %118, %121 : vector<8x8x8xf32>
    %123 = math.exp %122 : vector<8x8x8xf32>
    %cst_50 = arith.constant dense<0.000000e+00> : vector<8x8xf32>
    %124 = vector.multi_reduction <add>, %123, %cst_50 [2] : vector<8x8x8xf32> to vector<8x8xf32>
    %125 = vector.shape_cast %124 : vector<8x8xf32> to vector<8x8x1xf32>
    %126 = tpu.reciprocal %125 {approx = true} : vector<8x8x1xf32> -> vector<8x8x1xf32>
    %127 = vector.broadcast %126 : vector<8x8x1xf32> to vector<8x8x8xf32>
    %128 = arith.mulf %123, %127 : vector<8x8x8xf32>
    %129 = arith.truncf %128 : vector<8x8x8xf32> to vector<8x8x8xbf16>
    %130 = arith.truncf %114 : vector<8x8x8xf32> to vector<8x8x8xbf16>
    "tpu.trace_start"() <{level = 10 : i32, message = "gqk,gkd->gqd"}> : () -> ()
    %cst_51 = arith.constant dense<0.000000e+00> : vector<8x8x8xf32>
    %131 = tpu.matmul %129, %130, %cst_51 {dimension_numbers = #tpu.dot_dimension_numbers<[2], [1], [1], [2], [0, 0, 0, 1, 1, 2], [0], [0]>} : vector<8x8x8xbf16>, vector<8x8x8xbf16>, vector<8x8x8xf32> -> vector<8x8x8xf32>
    "tpu.trace_stop"() : () -> ()
    %132 = vector.shape_cast %131 : vector<8x8x8xf32> to vector<4x16x8xf32>
    %133 = arith.truncf %132 : vector<4x16x8xf32> to vector<4x16x8xbf16>
    %c1_52 = arith.constant 1 : index
    %c0_53 = arith.constant 0 : index
    %c0_54 = arith.constant 0 : index
    %c0_55 = arith.constant 0 : index
    %134 = vector.load %arg3[%c1_52, %c0_53, %c0_54, %c0_55] : memref<2x4x8x32xbf16, #tpu.memory_space<vmem>>, vector<1x4x8x32xbf16>
    %135 = vector.shape_cast %134 : vector<1x4x8x32xbf16> to vector<4x8x32xbf16>
    "tpu.trace_start"() <{level = 10 : i32, message = "hnd,hdm->hnm"}> : () -> ()
    %cst_56 = arith.constant dense<0.000000e+00> : vector<4x16x32xf32>
    %136 = tpu.matmul %133, %135, %cst_56 {dimension_numbers = #tpu.dot_dimension_numbers<[2], [1], [1], [2], [0, 0, 0, 1, 1, 2], [0], [0]>} : vector<4x16x8xbf16>, vector<4x8x32xbf16>, vector<4x16x32xf32> -> vector<4x16x32xf32>
    "tpu.trace_stop"() : () -> ()
    %137 = vector.extract_strided_slice %136 {offsets = [0, 0, 0], sizes = [1, 16, 32], strides = [1, 1, 1]} : vector<4x16x32xf32> to vector<1x16x32xf32>
    %138 = vector.shape_cast %137 : vector<1x16x32xf32> to vector<16x32xf32>
    %139 = vector.extract_strided_slice %136 {offsets = [1, 0, 0], sizes = [1, 16, 32], strides = [1, 1, 1]} : vector<4x16x32xf32> to vector<1x16x32xf32>
    %140 = vector.shape_cast %139 : vector<1x16x32xf32> to vector<16x32xf32>
    %141 = arith.addf %138, %140 : vector<16x32xf32>
    %142 = vector.extract_strided_slice %136 {offsets = [2, 0, 0], sizes = [1, 16, 32], strides = [1, 1, 1]} : vector<4x16x32xf32> to vector<1x16x32xf32>
    %143 = vector.shape_cast %142 : vector<1x16x32xf32> to vector<16x32xf32>
    %144 = arith.addf %141, %143 : vector<16x32xf32>
    %145 = vector.extract_strided_slice %136 {offsets = [3, 0, 0], sizes = [1, 16, 32], strides = [1, 1, 1]} : vector<4x16x32xf32> to vector<1x16x32xf32>
    %146 = vector.shape_cast %145 : vector<1x16x32xf32> to vector<16x32xf32>
    %147 = arith.addf %144, %146 : vector<16x32xf32>
    %148 = arith.addf %87, %147 : vector<16x32xf32>
    %c1_57 = arith.constant 1 : index
    %c0_58 = arith.constant 0 : index
    %c0_59 = arith.constant 0 : index
    %149 = vector.load %arg7[%c1_57, %c0_58, %c0_59] : memref<2x1x32xf32, #tpu.memory_space<vmem>>, vector<1x1x32xf32>
    %150 = vector.shape_cast %149 : vector<1x1x32xf32> to vector<1x32xf32>
    %151 = arith.mulf %148, %148 : vector<16x32xf32>
    %cst_60 = arith.constant dense<0.000000e+00> : vector<16xf32>
    %152 = vector.multi_reduction <add>, %151, %cst_60 [1] : vector<16x32xf32> to vector<16xf32>
    %153 = vector.shape_cast %152 : vector<16xf32> to vector<16x1xf32>
    %cst_61 = arith.constant 3.200000e+01 : f32
    %154 = vector.broadcast %cst_61 : f32 to vector<16x1xf32>
    %155 = arith.divf %153, %154 : vector<16x1xf32>
    %cst_62 = arith.constant 9.99999997E-7 : f32
    %156 = vector.broadcast %cst_62 : f32 to vector<16x1xf32>
    %157 = arith.addf %155, %156 : vector<16x1xf32>
    %158 = math.rsqrt %157 : vector<16x1xf32>
    %159 = vector.broadcast %158 : vector<16x1xf32> to vector<16x32xf32>
    %160 = arith.mulf %148, %159 : vector<16x32xf32>
    %161 = vector.broadcast %150 : vector<1x32xf32> to vector<16x32xf32>
    %162 = arith.mulf %160, %161 : vector<16x32xf32>
    %163 = arith.truncf %162 : vector<16x32xf32> to vector<16x32xbf16>
    %c1_63 = arith.constant 1 : index
    %c0_64 = arith.constant 0 : index
    %c0_65 = arith.constant 0 : index
    %164 = vector.load %arg4[%c1_63, %c0_64, %c0_65] : memref<2x32x64xbf16, #tpu.memory_space<vmem>>, vector<1x32x64xbf16>
    %165 = vector.shape_cast %164 : vector<1x32x64xbf16> to vector<32x64xbf16>
    %cst_66 = arith.constant dense<0.000000e+00> : vector<16x64xf32>
    %166 = tpu.matmul %163, %165, %cst_66 {dimension_numbers = #tpu.dot_dimension_numbers<[1], [0], [0], [1], [0, 0, 1, 1], [], []>} : vector<16x32xbf16>, vector<32x64xbf16>, vector<16x64xf32> -> vector<16x64xf32>
    %cst_67 = arith.constant 0.000000e+00 : f32
    %167 = vector.broadcast %cst_67 : f32 to vector<16x64xf32>
    %168 = arith.maximumf %166, %167 : vector<16x64xf32>
    %169 = arith.truncf %168 : vector<16x64xf32> to vector<16x64xbf16>
    %c1_68 = arith.constant 1 : index
    %c0_69 = arith.constant 0 : index
    %c0_70 = arith.constant 0 : index
    %170 = vector.load %arg5[%c1_68, %c0_69, %c0_70] : memref<2x64x32xbf16, #tpu.memory_space<vmem>>, vector<1x64x32xbf16>
    %171 = vector.shape_cast %170 : vector<1x64x32xbf16> to vector<64x32xbf16>
    %cst_71 = arith.constant dense<0.000000e+00> : vector<16x32xf32>
    %172 = tpu.matmul %169, %171, %cst_71 {dimension_numbers = #tpu.dot_dimension_numbers<[1], [0], [0], [1], [0, 0, 1, 1], [], []>} : vector<16x64xbf16>, vector<64x32xbf16>, vector<16x32xf32> -> vector<16x32xf32>
    %173 = arith.addf %148, %172 : vector<16x32xf32>
    %c0_72 = arith.constant 0 : index
    %c0_73 = arith.constant 0 : index
    %174 = vector.load %arg8[%c0_72, %c0_73] : memref<1x32xf32, #tpu.memory_space<vmem>>, vector<1x32xf32>
    %175 = arith.mulf %173, %173 : vector<16x32xf32>
    %cst_74 = arith.constant dense<0.000000e+00> : vector<16xf32>
    %176 = vector.multi_reduction <add>, %175, %cst_74 [1] : vector<16x32xf32> to vector<16xf32>
    %177 = vector.shape_cast %176 : vector<16xf32> to vector<16x1xf32>
    %cst_75 = arith.constant 3.200000e+01 : f32
    %178 = vector.broadcast %cst_75 : f32 to vector<16x1xf32>
    %179 = arith.divf %177, %178 : vector<16x1xf32>
    %cst_76 = arith.constant 9.99999997E-7 : f32
    %180 = vector.broadcast %cst_76 : f32 to vector<16x1xf32>
    %181 = arith.addf %179, %180 : vector<16x1xf32>
    %182 = math.rsqrt %181 : vector<16x1xf32>
    %183 = vector.broadcast %182 : vector<16x1xf32> to vector<16x32xf32>
    %184 = arith.mulf %173, %183 : vector<16x32xf32>
    %185 = vector.broadcast %174 : vector<1x32xf32> to vector<16x32xf32>
    %186 = arith.mulf %184, %185 : vector<16x32xf32>
    %c0_77 = arith.constant 0 : index
    %c0_78 = arith.constant 0 : index
    %187 = vector.load %arg9[%c0_77, %c0_78] : memref<16x32xf32, #tpu.memory_space<vmem>>, vector<16x32xf32>
    tpu.vector_store %arg9[%c0_77, %c0_78], %186 {strides = array<i32>} : memref<16x32xf32, #tpu.memory_space<vmem>>, vector<16x32xf32>,
    return
  }
}

</mosaic_0001>

<bundles_post_ra>
// kernel: t5_decoder_forward.1
= control target key start
LH: loop header
LB: loop body
LE: loop exit
PB: predicated region body
PF: predicated region fallthrough
CT: control target
= control target key end

     0   :  { %vm47_vm0 = vcmask 261120   ;;  %v4998_v8 = vmov 0.0   ;;  %vm4999_vm1 = vmmov 0   ;;  %s5887_s0 = inlined_call_operand.vmem [shape: f32[16,32], index: 0, kind: input, shape index: {}]   ;;  %s5888_s1 = inlined_call_operand.vmem [shape: f32[8,8,8], index: 1, kind: input, shape index: {}]   ;;  %s5889_s2 = inlined_call_operand.vmem [shape: bf16[2,12,32,8], index: 2, kind: input, shape index: {}]   ;;  %s5890_s3 = inlined_call_operand.vmem [shape: bf16[2,4,8,32], index: 3, kind: input, shape index: {}]   ;;  %s5891_s4 = inlined_call_operand.vmem [shape: bf16[2,32,64], index: 4, kind: input, shape index: {}]   ;;  %s5892_s5 = inlined_call_operand.vmem [shape: bf16[2,64,32], index: 5, kind: input, shape index: {}]   ;;  %s5893_s6 = inlined_call_operand.vmem [shape: f32[2,1,32], index: 6, kind: input, shape index: {}]   ;;  %s5894_s7 = inlined_call_operand.vmem [shape: f32[2,1,32], index: 7, kind: input, shape index: {}]   ;;  %s5895_s8 = inlined_call_operand.vmem [shape: f32[1,32], index: 8, kind: input, shape index: {}]   ;;  %s5896_s9 = inlined_call_operand.hbm [shape: f32[16,32], index: 9, kind: output, shape index: {}]  }
   0x1   :  { %v34_v0 = vld [vmem:[%s5887_s0] sm:$0xff]  ;;  %v35_v1 = vld [vmem:[%s5887_s0 + $0x8] sm:$0xff]  ;;  %4345 = vmatprep.subr.bf16.mxu1 %v4998_v8  ;;  %4361 = vmatprep.subr.bf16.mxu0 %v4998_v8 }
   0x2   :  { %v45_v2 = vmul.f32 %v34_v0, %v34_v0  ;;  %v46_v3 = vmul.f32 %v35_v1, %v35_v1  ;;  %v4822_v6 = vld [vmem:[%s5889_s2 + $0x8] sm:$0xff]   ;;  %v4824_v9 = vld [vmem:[%s5889_s2] sm:$0xff]   ;;  %4349 = vmatprep.mubr.msk.bf16.mxu1 %vm4999_vm1, %v4998_v8  ;;  %4365 = vmatprep.mubr.msk.bf16.mxu0 %vm4999_vm1, %v4998_v8 }
   0x3   :  { %v4823_v7 = vld [vmem:[%s5889_s2 + $0x28] sm:$0xff]   ;;  %4346 = vmatpush3.bf16.msra.mxu1 %v4822_v6  ;;  %v4825_v10 = vld [vmem:[%s5889_s2 + $0x20] sm:$0xff]  }
   0x4   :  { %v48_v4 = vsel %vm47_vm0, %v45_v2, 0.0  ;;  %v51_v5 = vsel %vm47_vm0, %v46_v3, 0.0  ;;  %4362 = vmatpush3.bf16.msra.mxu0 %v4823_v7  ;;  %4347 = vmatprep.subr.bf16.mxu1 %v4998_v8 }
   0x5   :  { %49 = vadd.xlane.f32.xlu0 %v48_v4  ;;  %4363 = vmatprep.subr.bf16.mxu0 %v4998_v8 }
   0x7   :  { %4348 = vmatpush3.bf16.msra.mxu1 %v4824_v9 }
   0x8   :  { %4364 = vmatpush3.bf16.msra.mxu0 %v4825_v10  ;;  %4353 = vmatprep.subr.bf16.mxu1 %v4998_v8 }
   0x9   :  { %52 = vadd.xlane.f32.xlu0 %v51_v5  ;;  %4377 = vmatprep.subr.bf16.mxu0 %v4998_v8 }
   0xa   :  { %14 = vsyncpa [#allocation3], 0  ;;  %v3978_v20 = vld [vmem:[%s5893_s6] ss:$0 sm:$0xff]  ;;  %v4826_v24 = vld [vmem:[%s5889_s2 + $0x18] sm:$0xff]   ;;  %vm775_vm2 = vcmask 64512  }
   0xb   :  { %v4827_v25 = vld [vmem:[%s5889_s2 + $0x48] sm:$0xff]   ;;  %v4828_v27 = vld [vmem:[%s5889_s2 + $0x10] sm:$0xff]   ;;  %v4829_v28 = vld [vmem:[%s5889_s2 + $0x40] sm:$0xff]   ;;  %vm1251_vm3 = vcmask 1043456   ;;  %vm1942_vm4 = vcmask 523264  }
   0xc   :  { %v4830_v29 = vld [vmem:[%s5889_s2 + $0x38] sm:$0xff]   ;;  %v4831_v30 = vld [vmem:[%s5889_s2 + $0x68] sm:$0xff]   ;;  %v4832_v31 = vld [vmem:[%s5889_s2 + $0x30] sm:$0xff]  }
   0xd   :  { %v4833_v32 = vld [vmem:[%s5889_s2 + $0x60] sm:$0xff]   ;;  %v4834_v33 = vld [vmem:[%s5889_s2 + $0x58] sm:$0xff]   ;;  %v4835_v34 = vld [vmem:[%s5889_s2 + $0x88] sm:$0xff]  }
   0xe   :  { %v4836_v35 = vld [vmem:[%s5889_s2 + $0x50] sm:$0xff]   ;;  %v4837_v36 = vld [vmem:[%s5889_s2 + $0x80] sm:$0xff]   ;;  %v4838_v37 = vld [vmem:[%s5889_s2 + $0x78] sm:$0xff]  }
   0xf   :  { %v4839_v38 = vld [vmem:[%s5889_s2 + $0xa8] sm:$0xff]   ;;  %v4840_v39 = vld [vmem:[%s5889_s2 + $0x70] sm:$0xff]   ;;  %v4841_v40 = vld [vmem:[%s5889_s2 + $0xa0] sm:$0xff]  }
  0x10   :  { %v4842_v41 = vld [vmem:[%s5889_s2 + $0x98] sm:$0xff]   ;;  %v4843_v42 = vld [vmem:[%s5889_s2 + $0x90] sm:$0xff]  }
  0x11   :  { %v4844_v43 = vld [vmem:[%s5889_s2 + $0xb8] sm:$0xff]   ;;  %v4845_v44 = vld [vmem:[%s5889_s2 + $0xb0] sm:$0xff]  }
  0x8e   :  { %v50_v11 = vpop.xlane.xlu0 %49 }
  0x8f   :  { %v55_v12 = vmul.f32 0.03125, %v50_v11 }
  0x91   :  { %v57_v13 = vadd.f32 1e-06, %v55_v12 }
  0x92   :  { %v53_v14 = vpop.xlane.xlu0 %52 }
  0x93   :  { %4882 = vrsqrt.f32 %v57_v13  ;;  %v56_v15 = vmul.f32 0.03125, %v53_v14 }
  0x95   :  { %v58_v16 = vadd.f32 1e-06, %v56_v15 }
  0x97   :  { %4884 = vrsqrt.f32 %v58_v16 }
  0xa0   :  { %v4883_v17 = vpop.eup %4882 }
  0xa1   :  { %v61_v18 = vmul.f32 %v4883_v17, %v34_v0 }
  0xa3   :  { %v69_v22 = vmul.f32 %v3978_v20, %v61_v18 }
  0xa4   :  { %v4885_v19 = vpop.eup %4884 }
  0xa5   :  { %v62_v21 = vmul.f32 %v4885_v19, %v35_v1 }
  0xa7   :  { %v70_v23 = vmul.f32 %v3978_v20, %v62_v21 }
  0xa9   :  { %v5092_v26 = vpack.c.bf16 %v70_v23, %v69_v22 }
  0xab   :  { %4350 = vmatmul.mubr.msk.bf16.vlgmr.msra.gmra.mxu1 %vm47_vm0, %v5092_v26  ;;  %4366 = vmatmul.mubr.msk.bf16.vlgmr.msra.gmra.mxu0 %vm47_vm0, %v5092_v26 }
  0xac   :  { %4354 = vmatpush3.bf16.msra.mxu1 %v4826_v24  ;;  %4378 = vmatpush3.bf16.msra.mxu0 %v4827_v25 }
  0xad   :  { %4355 = vmatprep.subr.bf16.mxu1 %v4998_v8  ;;  %4379 = vmatprep.subr.bf16.mxu0 %v4998_v8 }
  0xae   :  { %4357 = vmatprep.mubr.msk.bf16.mxu1 %vm4999_vm1, %v4998_v8  ;;  %4381 = vmatprep.mubr.msk.bf16.mxu0 %vm4999_vm1, %v4998_v8 }
  0xb0   :  { %4356 = vmatpush3.bf16.msra.mxu1 %v4828_v27  ;;  %4380 = vmatpush3.bf16.msra.mxu0 %v4829_v28 }
  0xb1   :  { %4369 = vmatprep.subr.bf16.mxu1 %v4998_v8  ;;  %4393 = vmatprep.subr.bf16.mxu0 %v4998_v8 }
  0xb3   :  { %4358 = vmatmul.mubr.msk.bf16.vlgmr.msra.gmra.mxu1 %vm47_vm0, %v5092_v26  ;;  %4382 = vmatmul.mubr.msk.bf16.vlgmr.msra.gmra.mxu0 %vm47_vm0, %v5092_v26 }
  0xb4   :  { %4370 = vmatpush3.bf16.msra.mxu1 %v4830_v29  ;;  %4394 = vmatpush3.bf16.msra.mxu0 %v4831_v30 }
  0xb5   :  { %4371 = vmatprep.subr.bf16.mxu1 %v4998_v8  ;;  %4395 = vmatprep.subr.bf16.mxu0 %v4998_v8 }
  0xb6   :  { %4373 = vmatprep.mubr.msk.bf16.mxu1 %vm4999_vm1, %v4998_v8  ;;  %4397 = vmatprep.mubr.msk.bf16.mxu0 %vm4999_vm1, %v4998_v8 }
  0xb8   :  { %4372 = vmatpush3.bf16.msra.mxu1 %v4832_v31  ;;  %4396 = vmatpush3.bf16.msra.mxu0 %v4833_v32 }
  0xb9   :  { %4385 = vmatprep.subr.bf16.mxu1 %v4998_v8  ;;  %4409 = vmatprep.subr.bf16.mxu0 %v4998_v8 }
  0xbb   :  { %4374 = vmatmul.mubr.msk.bf16.vlgmr.msra.gmra.mxu1 %vm47_vm0, %v5092_v26  ;;  %4398 = vmatmul.mubr.msk.bf16.vlgmr.msra.gmra.mxu0 %vm47_vm0, %v5092_v26 }
  0xbc   :  { %4386 = vmatpush3.bf16.msra.mxu1 %v4834_v33  ;;  %4410 = vmatpush3.bf16.msra.mxu0 %v4835_v34 }
  0xbd   :  { %4387 = vmatprep.subr.bf16.mxu1 %v4998_v8  ;;  %4411 = vmatprep.subr.bf16.mxu0 %v4998_v8 }
  0xbe   :  { %4389 = vmatprep.mubr.msk.bf16.mxu1 %vm4999_vm1, %v4998_v8  ;;  %4413 = vmatprep.mubr.msk.bf16.mxu0 %vm4999_vm1, %v4998_v8 }
  0xc0   :  { %4388 = vmatpush3.bf16.msra.mxu1 %v4836_v35  ;;  %4412 = vmatpush3.bf16.msra.mxu0 %v4837_v36 }
  0xc1   :  { %4401 = vmatprep.subr.bf16.mxu1 %v4998_v8  ;;  %4425 = vmatprep.subr.bf16.mxu0 %v4998_v8 }
  0xc3   :  { %4390 = vmatmul.mubr.msk.bf16.vlgmr.msra.gmra.mxu1 %vm47_vm0, %v5092_v26  ;;  %4414 = vmatmul.mubr.msk.bf16.vlgmr.msra.gmra.mxu0 %vm47_vm0, %v5092_v26 }
  0xc4   :  { %4402 = vmatpush3.bf16.msra.mxu1 %v4838_v37  ;;  %4426 = vmatpush3.bf16.msra.mxu0 %v4839_v38 }
  0xc5   :  { %4403 = vmatprep.subr.bf16.mxu1 %v4998_v8  ;;  %4427 = vmatprep.subr.bf16.mxu0 %v4998_v8 }
  0xc6   :  { %4405 = vmatprep.mubr.msk.bf16.mxu1 %vm4999_vm1, %v4998_v8  ;;  %4429 = vmatprep.mubr.msk.bf16.mxu0 %vm4999_vm1, %v4998_v8 }
  0xc8   :  { %4404 = vmatpush3.bf16.msra.mxu1 %v4840_v39  ;;  %4428 = vmatpush3.bf16.msra.mxu0 %v4841_v40 }
  0xc9   :  { %4417 = vmatprep.subr.bf16.mxu1 %v4998_v8  ;;  %4441 = vmatprep.subr.bf16.mxu0 %v4998_v8 }
  0xcb   :  { %4406 = vmatmul.mubr.msk.bf16.vlgmr.msra.gmra.mxu1 %vm47_vm0, %v5092_v26  ;;  %4430 = vmatmul.mubr.msk.bf16.vlgmr.msra.gmra.mxu0 %vm47_vm0, %v5092_v26 }
  0xcc   :  { %4418 = vmatpush3.bf16.msra.mxu1 %v4842_v41  ;;  %4421 = vmatprep.mubr.msk.bf16.mxu1 %vm4999_vm1, %v4998_v8 }
  0xcd   :  { %4419 = vmatprep.subr.bf16.mxu1 %v4998_v8  ;;  %4443 = vmatprep.mubr.msk.bf16.mxu0 %vm4999_vm1, %v4998_v8 }
  0xd0   :  { %4420 = vmatpush3.bf16.msra.mxu1 %v4843_v42 }
  0xd1   :  { %4433 = vmatprep.subr.bf16.mxu1 %v4998_v8 }
  0xd3   :  { %4422 = vmatmul.mubr.msk.bf16.vlgmr.msra.gmra.mxu1 %vm47_vm0, %v5092_v26 }
  0xd4   :  { %4434 = vmatpush3.bf16.msra.mxu1 %v4844_v43  ;;  %4437 = vmatprep.mubr.msk.bf16.mxu1 %vm4999_vm1, %v4998_v8 }
  0xd5   :  { %4435 = vmatprep.subr.bf16.mxu1 %v4998_v8 }
  0xd8   :  { %4436 = vmatpush3.bf16.msra.mxu1 %v4845_v44 }
  0xd9   :  { %4447 = vmatprep.subr.bf16.mxu1 %v4998_v8 }
  0xdb   :  { %4438 = vmatmul.mubr.msk.bf16.vlgmr.msra.gmra.mxu1 %vm47_vm0, %v5092_v26 }
  0xdc   :  { %4449 = vmatprep.mubr.msk.bf16.mxu1 %vm4999_vm1, %v4998_v8 }
 0x16b   :  { %v169_v45 = vpop.f32.mrf.mxu1  ;;  %v5216_v46 = vpop.f32.mrf.mxu0 }
 0x16c   :  { %v759_v3 = vpack.c.bf16 %v169_v45, %v169_v45  ;;  %v763_v40 = vpack.c.bf16 %v5216_v46, %v5216_v46 }
 0x16d   :  { %v4351_v47 = vpop.f32.mrf.mxu1  ;;  %v4367_v48 = vpop.f32.mrf.mxu0 }
 0x16f   :  { %v172_v49 = vpop.f32.mrf.mxu1  ;;  %v5218_v50 = vpop.f32.mrf.mxu0 }
 0x170   :  { %v760_v9 = vpack.c.bf16 %v172_v49, %v172_v49  ;;  %v764_v45 = vpack.c.bf16 %v5218_v50, %v5218_v50 }
 0x171   :  { %v4352_v51 = vpop.f32.mrf.mxu1  ;;  %v4368_v52 = vpop.f32.mrf.mxu0 }
 0x173   :  { %v222_v53 = vpop.f32.mrf.mxu1  ;;  %v381_v54 = vpop.f32.mrf.mxu0 }
 0x174   :  { %v767_v55 = vpack.c.bf16 %v381_v54, %v381_v54  ;;  %v761_v27 = vpack.c.bf16 %v222_v53, %v222_v53 }
 0x175   :  { %v4359_v56 = vpop.f32.mrf.mxu1  ;;  %v4383_v57 = vpop.f32.mrf.mxu0 }
 0x176   :  { %v780_v58 = vsel %vm775_vm2, %v767_v55, 0 }
 0x177   :  { %v225_v59 = vpop.f32.mrf.mxu1  ;;  %v384_v60 = vpop.f32.mrf.mxu0  ;;  %4442 = vmatpush3.bf16.xpose.msra.mxu0 %v780_v58  ;;  %v36_v58 = vld [vmem:[%s5888_s1] sm:$0xff] }
 0x178   :  { %v768_v61 = vpack.c.bf16 %v384_v60, %v384_v60  ;;  %4453 = vmatprep.subr.bf16.mxu0 %v4998_v8  ;;  %v762_v34 = vpack.c.bf16 %v225_v59, %v225_v59 }
 0x179   :  { %v4360_v62 = vpop.f32.mrf.mxu1  ;;  %v4384_v63 = vpop.f32.mrf.mxu0 }
 0x17a   :  { %v826_v0 = vsel %vm775_vm2, %v768_v61, 0  ;;  %v37_v62 = vld [vmem:[%s5888_s1 + $0x8] sm:$0xff] }
 0x17b   :  { %v5223_v1 = vpop.f32.mrf.mxu1  ;;  %v487_v2 = vpop.f32.mrf.mxu0  ;;  %4448 = vmatpush3.bf16.xpose.msra.mxu1 %v826_v0 }
 0x17c   :  { %4459 = vmatprep.subr.bf16.mxu1 %v4998_v8  ;;  %v771_v23 = vpack.c.bf16 %v487_v2, %v487_v2  ;;  %v765_v51 = vpack.c.bf16 %v5223_v1, %v5223_v1 }
 0x17d   :  { %v4375_v4 = vpop.f32.mrf.mxu1  ;;  %v4399_v5 = vpop.f32.mrf.mxu0 }
 0x17e   :  { %4444 = vmatmul.mubr.msk.bf16.vlgmr.msra.gmra.mxu0 %vm775_vm2, %v759_v3  ;;  %v964_v30 = vsel %vm775_vm2, %v771_v23, 0 }
 0x17f   :  { %v5227_v6 = vpop.f32.mrf.mxu1  ;;  %v490_v7 = vpop.f32.mrf.mxu0  ;;  %4455 = vmatprep.mubr.msk.bf16.mxu0 %vm4999_vm1, %v4998_v8 }
 0x180   :  { %v772_v31 = vpack.c.bf16 %v490_v7, %v490_v7  ;;  %v766_v55 = vpack.c.bf16 %v5227_v6, %v5227_v6 }
 0x181   :  { %v4376_v10 = vpop.f32.mrf.mxu1  ;;  %v4400_v11 = vpop.f32.mrf.mxu0 }
 0x182   :  { %4450 = vmatmul.mubr.msk.bf16.vlgmr.msra.gmra.mxu1 %vm775_vm2, %v760_v9  ;;  %v1010_v37 = vsel %vm775_vm2, %v772_v31, 0  ;;  %v38_v9 = vld [vmem:[%s5888_s1 + $0x10] sm:$0xff] }
 0x183   :  { %v434_v12 = vpop.f32.mrf.mxu1  ;;  %v593_v13 = vpop.f32.mrf.mxu0  ;;  %4461 = vmatprep.mubr.msk.bf16.mxu1 %vm4999_vm1, %v4998_v8 }
 0x184   :  { %v769_v14 = vpack.c.bf16 %v434_v12, %v434_v12  ;;  %v1240_v47 = vpack.c.bf16 %v593_v13, %v593_v13  ;;  %v39_v13 = vld [vmem:[%s5888_s1 + $0x18] sm:$0xff] }
 0x185   :  { %v4391_v15 = vpop.f32.mrf.mxu1  ;;  %v4415_v16 = vpop.f32.mrf.mxu0 }
 0x186   :  { %v872_v17 = vsel %vm775_vm2, %v769_v14, 0  ;;  %v1253_v52 = vsel %vm1251_vm3, %v1240_v47, 0 }
 0x187   :  { %v437_v18 = vpop.f32.mrf.mxu1  ;;  %v5235_v19 = vpop.f32.mrf.mxu0  ;;  %4454 = vmatpush3.bf16.xpose.msra.mxu0 %v872_v17 }
 0x188   :  { %v770_v20 = vpack.c.bf16 %v437_v18, %v437_v18  ;;  %4465 = vmatprep.subr.bf16.mxu0 %v4998_v8  ;;  %v1241_v53 = vpack.c.bf16 %v5235_v19, %v5235_v19 }
 0x189   :  { %v4392_v21 = vpop.f32.mrf.mxu1  ;;  %v4416_v22 = vpop.f32.mrf.mxu0 }
 0x18a   :  { %v918_v24 = vsel %vm775_vm2, %v770_v20, 0  ;;  %v1299_v57 = vsel %vm1251_vm3, %v1241_v53, 0  ;;  %v40_v20 = vld [vmem:[%s5888_s1 + $0x20] sm:$0xff] }
 0x18b   :  { %v540_v25 = vpop.f32.mrf.mxu1  ;;  %v5239_v26 = vpop.f32.mrf.mxu0  ;;  %4460 = vmatpush3.bf16.xpose.msra.mxu1 %v918_v24 }
 0x18c   :  { %4471 = vmatprep.subr.bf16.mxu1 %v4998_v8  ;;  %v773_v38 = vpack.c.bf16 %v540_v25, %v540_v25 }
 0x18d   :  { %v4407_v28 = vpop.f32.mrf.mxu1  ;;  %v4431_v29 = vpop.f32.mrf.mxu0 }
 0x18e   :  { %4456 = vmatmul.mubr.msk.bf16.vlgmr.msra.gmra.mxu0 %vm775_vm2, %v761_v27  ;;  %v1056_v42 = vsel %vm775_vm2, %v773_v38, 0  ;;  %v41_v28 = vld [vmem:[%s5888_s1 + $0x28] sm:$0xff] }
 0x18f   :  { %v543_v32 = vpop.f32.mrf.mxu1  ;;  %v5244_v33 = vpop.f32.mrf.mxu0  ;;  %4466 = vmatpush3.bf16.xpose.msra.mxu0 %v964_v30  ;;  %4467 = vmatprep.mubr.msk.bf16.mxu0 %vm4999_vm1, %v4998_v8 }
 0x190   :  { %4477 = vmatprep.subr.bf16.mxu0 %v4998_v8  ;;  %v774_v43 = vpack.c.bf16 %v543_v32, %v543_v32 }
 0x191   :  { %v4408_v35 = vpop.f32.mrf.mxu1  ;;  %v4432_v36 = vpop.f32.mrf.mxu0 }
 0x192   :  { %4462 = vmatmul.mubr.msk.bf16.vlgmr.msra.gmra.mxu1 %vm775_vm2, %v762_v34  ;;  %v1102_v48 = vsel %vm775_vm2, %v774_v43, 0  ;;  %v42_v36 = vld [vmem:[%s5888_s1 + $0x30] sm:$0xff] }
 0x193   :  { %v5251_v39 = vpop.f32.mrf.mxu1  ;;  %4472 = vmatpush3.bf16.xpose.msra.mxu1 %v1010_v37  ;;  %4473 = vmatprep.mubr.msk.bf16.mxu1 %vm4999_vm1, %v4998_v8 }
 0x194   :  { %4483 = vmatprep.subr.bf16.mxu1 %v4998_v8 }
 0x195   :  { %v4423_v41 = vpop.f32.mrf.mxu1 }
 0x196   :  { %4468 = vmatmul.mubr.msk.bf16.vlgmr.msra.gmra.mxu0 %vm775_vm2, %v763_v40 }
 0x197   :  { %v5260_v44 = vpop.f32.mrf.mxu1  ;;  %4478 = vmatpush3.bf16.xpose.msra.mxu0 %v1056_v42  ;;  %4479 = vmatprep.mubr.msk.bf16.mxu0 %vm4999_vm1, %v4998_v8 }
 0x198   :  { %4489 = vmatprep.subr.bf16.mxu0 %v4998_v8 }
 0x199   :  { %v4424_v46 = vpop.f32.mrf.mxu1 }
 0x19a   :  { %4474 = vmatmul.mubr.msk.bf16.vlgmr.msra.gmra.mxu1 %vm775_vm2, %v764_v45  ;;  %v43_v45 = vld [vmem:[%s5888_s1 + $0x38] sm:$0xff] }
 0x19b   :  { %v5269_v49 = vpop.f32.mrf.mxu1  ;;  %4484 = vmatpush3.bf16.xpose.msra.mxu1 %v1102_v48  ;;  %4485 = vmatprep.mubr.msk.bf16.mxu1 %vm4999_vm1, %v4998_v8 }
 0x19c   :  { %4495 = vmatprep.subr.bf16.mxu1 %v4998_v8 }
 0x19d   :  { %v4439_v50 = vpop.f32.mrf.mxu1 }
 0x19e   :  { %4480 = vmatmul.mubr.msk.bf16.vlgmr.msra.gmra.mxu0 %vm775_vm2, %v765_v51 }
 0x19f   :  { %v5280_v54 = vpop.f32.mrf.mxu1  ;;  %4490 = vmatpush3.bf16.msra.mxu0 %v1253_v52  ;;  %4491 = vmatprep.mubr.msk.bf16.mxu0 %vm4999_vm1, %v4998_v8 }
 0x1a0   :  { %4501 = vmatprep.subr.bf16.mxu0 %v4998_v8 }
 0x1a1   :  { %v4440_v56 = vpop.f32.mrf.mxu1 }
 0x1a2   :  { %4486 = vmatmul.mubr.msk.bf16.vlgmr.msra.gmra.mxu1 %vm775_vm2, %v766_v55 }
 0x1a3   :  { %4496 = vmatpush3.bf16.msra.mxu1 %v1299_v57  ;;  %4497 = vmatprep.mubr.msk.bf16.mxu1 %vm4999_vm1, %v4998_v8 }
 0x1a4   :  { %4507 = vmatprep.subr.bf16.mxu1 %v4998_v8 }
 0x23e   :  { %v816_v59 = vpop.f32.mrf.mxu0 }
 0x23f   :  { %v5295_v60 = vadd.f32 %v816_v59, %v36_v58 }
 0x240   :  { %v4445_v61 = vpop.f32.mrf.mxu0 }
 0x241   :  { %v1144_v63 = vsel %vm775_vm2, %v5295_v60, -inf }
 0x242   :  { %1145 = vmax.xlane.f32.xlu1 %v1144_v63  ;;  %v819_v0 = vpop.f32.mrf.mxu0  ;;  %v862_v1 = vpop.f32.mrf.mxu1 }
 0x243   :  { %v863_v2 = vadd.f32 %v862_v1, %v37_v62 }
 0x244   :  { %v4446_v3 = vpop.f32.mrf.mxu0  ;;  %v4451_v4 = vpop.f32.mrf.mxu1 }
 0x245   :  { %v1147_v5 = vsel %vm775_vm2, %v863_v2, -inf }
 0x246   :  { %1148 = vmax.xlane.f32.xlu1 %v1147_v5  ;;  %v865_v6 = vpop.f32.mrf.mxu1 }
 0x248   :  { %v4452_v7 = vpop.f32.mrf.mxu1 }
 0x24e   :  { %v908_v10 = vpop.f32.mrf.mxu0 }
 0x24f   :  { %v909_v11 = vadd.f32 %v908_v10, %v38_v9 }
 0x250   :  { %v4457_v12 = vpop.f32.mrf.mxu0 }
 0x251   :  { %v1150_v14 = vsel %vm775_vm2, %v909_v11, -inf }
 0x252   :  { %1151 = vmax.xlane.f32.xlu0 %v1150_v14  ;;  %v911_v15 = vpop.f32.mrf.mxu0  ;;  %v954_v16 = vpop.f32.mrf.mxu1 }
 0x253   :  { %v955_v17 = vadd.f32 %v954_v16, %v39_v13 }
 0x254   :  { %v4458_v18 = vpop.f32.mrf.mxu0  ;;  %v4463_v19 = vpop.f32.mrf.mxu1 }
 0x255   :  { %v1153_v21 = vsel %vm775_vm2, %v955_v17, -inf }
 0x256   :  { %v1000_v22 = vpop.f32.mrf.mxu0  ;;  %1154 = vmax.xlane.f32.xlu1 %v1153_v21  ;;  %v957_v23 = vpop.f32.mrf.mxu1 }
 0x257   :  { %v1001_v24 = vadd.f32 %v1000_v22, %v40_v20 }
 0x258   :  { %v4464_v25 = vpop.f32.mrf.mxu1  ;;  %v4469_v27 = vpop.f32.mrf.mxu0 }
 0x259   :  { %v1156_v29 = vsel %vm775_vm2, %v1001_v24, -inf }
 0x25a   :  { %1157 = vmax.xlane.f32.xlu0 %v1156_v29  ;;  %v1003_v30 = vpop.f32.mrf.mxu0  ;;  %v1046_v31 = vpop.f32.mrf.mxu1 }
 0x25b   :  { %v1047_v32 = vadd.f32 %v1046_v31, %v41_v28 }
 0x25c   :  { %v4470_v34 = vpop.f32.mrf.mxu0  ;;  %v4475_v35 = vpop.f32.mrf.mxu1 }
 0x25d   :  { %v1159_v37 = vsel %vm775_vm2, %v1047_v32, -inf }
 0x25e   :  { %v1092_v38 = vpop.f32.mrf.mxu0  ;;  %1160 = vmax.xlane.f32.xlu1 %v1159_v37  ;;  %v1049_v40 = vpop.f32.mrf.mxu1 }
 0x25f   :  { %v1093_v41 = vadd.f32 %v1092_v38, %v42_v36  ;;  %v1242_v40 = vpack.c.bf16 %v5251_v39, %v5251_v39 }
 0x260   :  { %v4476_v42 = vpop.f32.mrf.mxu1  ;;  %v4481_v43 = vpop.f32.mrf.mxu0 }
 0x261   :  { %v1162_v46 = vsel %vm775_vm2, %v1093_v41, -inf }
 0x262   :  { %1163 = vmax.xlane.f32.xlu0 %v1162_v46  ;;  %v1095_v47 = vpop.f32.mrf.mxu0  ;;  %v1138_v48 = vpop.f32.mrf.mxu1  ;;  %v1345_v46 = vsel %vm1251_vm3, %v1242_v40, 0 }
 0x263   :  { %v1139_v51 = vadd.f32 %v1138_v48, %v43_v45  ;;  %v1243_v47 = vpack.c.bf16 %v5260_v44, %v5260_v44 }
 0x264   :  { %v4482_v50 = vpop.f32.mrf.mxu0  ;;  %v4487_v52 = vpop.f32.mrf.mxu1 }
 0x265   :  { %v1165_v53 = vsel %vm775_vm2, %v1139_v51, -inf  ;;  %v1391_v50 = vsel %vm1251_vm3, %v1243_v47, 0 }
 0x266   :  { %1166 = vmax.xlane.f32.xlu1 %v1165_v53  ;;  %v1141_v55 = vpop.f32.mrf.mxu1 }
 0x267   :  { %v1244_v55 = vpack.c.bf16 %v5239_v26, %v5239_v26 }
 0x268   :  { %v4488_v56 = vpop.f32.mrf.mxu1 }
 0x2cb   :  { %v1146_v57 = vpop.xlane.xlu1 %1145 }
 0x2cc   :  { %v1168_v58 = vsub.f32 %v5295_v60, %v1146_v57 }
 0x2ce   :  { %v1176_v59 = vmul.f32 1.442695, %v1168_v58 }
 0x2cf   :  { %v1149_v61 = vpop.xlane.xlu1 %1148 }
 0x2d0   :  { %4886 = vpow2.f32 %v1176_v59  ;;  %v1169_v62 = vsub.f32 %v863_v2, %v1149_v61  ;;  %v1437_v61 = vsel %vm1251_vm3, %v1244_v55, 0 }
 0x2d2   :  { %v1178_v63 = vmul.f32 1.442695, %v1169_v62  ;;  %v1245_v62 = vpack.c.bf16 %v5244_v33, %v5244_v33 }
 0x2d4   :  { %4888 = vpow2.f32 %v1178_v63 }
 0x2db   :  { %v1152_v0 = vpop.xlane.xlu0 %1151 }
 0x2dc   :  { %v1170_v1 = vsub.f32 %v909_v11, %v1152_v0 }
 0x2dd   :  { %v4887_v3 = vpop.eup %4886 }
 0x2de   :  { %v1180_v4 = vmul.f32 1.442695, %v1170_v1  ;;  %v1192_v5 = vsel %vm775_vm2, %v4887_v3, 0.0 }
 0x2df   :  { %1193 = vadd.xlane.f32.xlu0 %v1192_v5  ;;  %v1155_v6 = vpop.xlane.xlu1 %1154 }
 0x2e0   :  { %4890 = vpow2.f32 %v1180_v4  ;;  %v1171_v7 = vsub.f32 %v955_v17, %v1155_v6  ;;  %v1246_v4 = vpack.c.bf16 %v5269_v49, %v5269_v49 }
 0x2e1   :  { %v4889_v9 = vpop.eup %4888 }
 0x2e2   :  { %v1182_v10 = vmul.f32 1.442695, %v1171_v7  ;;  %v1195_v60 = vsel %vm775_vm2, %v4889_v9, 0.0  ;;  %v1529_v7 = vsel %vm1251_vm3, %v1246_v4, 0 }
 0x2e3   :  { %v1158_v12 = vpop.xlane.xlu0 %1157  ;;  %1196 = vadd.xlane.f32.xlu1 %v1195_v60 }
 0x2e4   :  { %4892 = vpow2.f32 %v1182_v10  ;;  %v1172_v2 = vsub.f32 %v1001_v24, %v1158_v12 }
 0x2e6   :  { %v1184_v13 = vmul.f32 1.442695, %v1172_v2 }
 0x2e7   :  { %v1161_v14 = vpop.xlane.xlu1 %1160 }
 0x2e8   :  { %4894 = vpow2.f32 %v1184_v13  ;;  %v1173_v11 = vsub.f32 %v1047_v32, %v1161_v14 }
 0x2ea   :  { %v1186_v15 = vmul.f32 1.442695, %v1173_v11 }
 0x2eb   :  { %v1164_v16 = vpop.xlane.xlu0 %1163 }
 0x2ec   :  { %4896 = vpow2.f32 %v1186_v15  ;;  %v1174_v18 = vsub.f32 %v1093_v41, %v1164_v16  ;;  %v1621_v15 = vld [vmem:[%s5890_s3] sm:$0xf] }
 0x2ed   :  { %v4891_v19 = vpop.eup %4890  ;;  %v1629_v16 = vsel %vm1251_vm3, %v1621_v15, 0  ;;  %v4966_v15 = vld [vmem:[%s5887_s0] sm:$0xff] }
 0x2ee   :  { %v1188_v20 = vmul.f32 1.442695, %v1174_v18  ;;  %v1198_v17 = vsel %vm775_vm2, %v4891_v19, 0.0  ;;  %v1622_v18 = vld [vmem:[%s5890_s3 + $0x4] sm:$0xf] }
 0x2ef   :  { %1199 = vadd.xlane.f32.xlu0 %v1198_v17  ;;  %v1167_v21 = vpop.xlane.xlu1 %1166 }
 0x2f0   :  { %4898 = vpow2.f32 %v1188_v20  ;;  %v1175_v22 = vsub.f32 %v1139_v51, %v1167_v21  ;;  %v1623_v21 = vld [vmem:[%s5890_s3 + $0x8] sm:$0xf] }
 0x2f1   :  { %v4893_v23 = vpop.eup %4892 }
 0x2f2   :  { %v1190_v25 = vmul.f32 1.442695, %v1175_v22  ;;  %v1201_v24 = vsel %vm775_vm2, %v4893_v23, 0.0 }
 0x2f3   :  { %1202 = vadd.xlane.f32.xlu1 %v1201_v24  ;;  %v1723_v24 = vsel %vm1251_vm3, %v1623_v21, 0  ;;  %v4967_v21 = vld [vmem:[%s5887_s0 + $0x8] sm:$0xff] }
 0x2f4   :  { %4900 = vpow2.f32 %v1190_v25 }
 0x2f5   :  { %v5332_v27 = vpop.eup %4894 }
 0x2f6   :  { %v1204_v28 = vsel %vm775_vm2, %v5332_v27, 0.0 }
 0x2f7   :  { %1205 = vadd.xlane.f32.xlu0 %v1204_v28 }
 0x2f9   :  { %v5336_v29 = vpop.eup %4896 }
 0x2fa   :  { %v1207_v30 = vsel %vm775_vm2, %v5336_v29, 0.0 }
 0x2fb   :  { %1208 = vadd.xlane.f32.xlu1 %v1207_v30 }
 0x2fd   :  { %v5340_v31 = vpop.eup %4898 }
 0x2fe   :  { %v1210_v32 = vsel %vm775_vm2, %v5340_v31, 0.0 }
 0x2ff   :  { %1211 = vadd.xlane.f32.xlu0 %v1210_v32 }
 0x301   :  { %v5344_v34 = vpop.eup %4900 }
 0x302   :  { %v1213_v35 = vsel %vm775_vm2, %v5344_v34, 0.0 }
 0x303   :  { %1214 = vadd.xlane.f32.xlu1 %v1213_v35 }
 0x368   :  { %v1194_v36 = vpop.xlane.xlu0 %1193 }
 0x369   :  { %4902 = vrcp.f32 %v1194_v36 }
 0x36c   :  { %v1197_v37 = vpop.xlane.xlu1 %1196 }
 0x36d   :  { %4904 = vrcp.f32 %v1197_v37 }
 0x376   :  { %v4903_v38 = vpop.eup %4902 }
 0x377   :  { %v1224_v41 = vmul.f32 %v4903_v38, %v4887_v3  ;;  %v1483_v3 = vsel %vm1251_vm3, %v1245_v62, 0 }
 0x378   :  { %v1200_v42 = vpop.xlane.xlu0 %1199 }
 0x379   :  { %4906 = vrcp.f32 %v1200_v42  ;;  %v1232_v43 = vpack.c.bf16 %v1224_v41, %v1224_v41 }
 0x37a   :  { %v4905_v45 = vpop.eup %4904 }
 0x37b   :  { %4492 = vmatmul.mubr.msk.bf16.vlgmr.msra.gmra.mxu0 %vm775_vm2, %v1232_v43  ;;  %v1225_v48 = vmul.f32 %v4905_v45, %v4889_v9  ;;  %v1247_v9 = vpack.c.bf16 %v5280_v54, %v5280_v54 }
 0x37c   :  { %4502 = vmatpush3.bf16.msra.mxu0 %v1345_v46  ;;  %v1203_v51 = vpop.xlane.xlu1 %1202  ;;  %4503 = vmatprep.mubr.msk.bf16.mxu0 %vm4999_vm1, %v4998_v8 }
 0x37d   :  { %4908 = vrcp.f32 %v1203_v51  ;;  %v1233_v39 = vpack.c.bf16 %v1225_v48, %v1225_v48  ;;  %4513 = vmatprep.subr.bf16.mxu0 %v4998_v8  ;;  %v1575_v12 = vsel %vm1251_vm3, %v1247_v9, 0 }
 0x37f   :  { %4498 = vmatmul.mubr.msk.bf16.vlgmr.msra.gmra.mxu1 %vm775_vm2, %v1233_v39 }
 0x380   :  { %4508 = vmatpush3.bf16.msra.mxu1 %v1391_v50  ;;  %v1206_v52 = vpop.xlane.xlu0 %1205  ;;  %4509 = vmatprep.mubr.msk.bf16.mxu1 %vm4999_vm1, %v4998_v8 }
 0x381   :  { %4910 = vrcp.f32 %v1206_v52  ;;  %4519 = vmatprep.subr.bf16.mxu1 %v4998_v8 }
 0x384   :  { %v1209_v44 = vpop.xlane.xlu1 %1208 }
 0x385   :  { %4912 = vrcp.f32 %v1209_v44 }
 0x386   :  { %v4907_v53 = vpop.eup %4906 }
 0x387   :  { %v1226_v56 = vmul.f32 %v4907_v53, %v4891_v19  ;;  %v1676_v19 = vsel %vm1251_vm3, %v1622_v18, 0 }
 0x388   :  { %v1212_v57 = vpop.xlane.xlu0 %1211 }
 0x389   :  { %4914 = vrcp.f32 %v1212_v57  ;;  %v1234_v58 = vpack.c.bf16 %v1226_v56, %v1226_v56 }
 0x38a   :  { %v4909_v59 = vpop.eup %4908 }
 0x38b   :  { %4504 = vmatmul.mubr.msk.bf16.vlgmr.msra.gmra.mxu0 %vm775_vm2, %v1234_v58  ;;  %v1227_v63 = vmul.f32 %v4909_v59, %v4893_v23 }
 0x38c   :  { %4514 = vmatpush3.bf16.msra.mxu0 %v1437_v61  ;;  %v1215_v0 = vpop.xlane.xlu1 %1214  ;;  %4515 = vmatprep.mubr.msk.bf16.mxu0 %vm4999_vm1, %v4998_v8 }
 0x38d   :  { %4916 = vrcp.f32 %v1215_v0  ;;  %v1235_v26 = vpack.c.bf16 %v1227_v63, %v1227_v63  ;;  %4525 = vmatprep.subr.bf16.mxu0 %v4998_v8 }
 0x38e   :  { %v4911_v1 = vpop.eup %4910 }
 0x38f   :  { %4510 = vmatmul.mubr.msk.bf16.vlgmr.msra.gmra.mxu1 %vm775_vm2, %v1235_v26  ;;  %v1228_v33 = vmul.f32 %v4911_v1, %v5332_v27 }
 0x390   :  { %4520 = vmatpush3.bf16.msra.mxu1 %v1483_v3  ;;  %4521 = vmatprep.mubr.msk.bf16.mxu1 %vm4999_vm1, %v4998_v8 }
 0x391   :  { %v1236_v5 = vpack.c.bf16 %v1228_v33, %v1228_v33  ;;  %4531 = vmatprep.subr.bf16.mxu1 %v4998_v8 }
 0x392   :  { %v4913_v6 = vpop.eup %4912 }
 0x393   :  { %4516 = vmatmul.mubr.msk.bf16.vlgmr.msra.gmra.mxu0 %vm775_vm2, %v1236_v5  ;;  %v1229_v49 = vmul.f32 %v4913_v6, %v5336_v29 }
 0x394   :  { %4526 = vmatpush3.bf16.msra.mxu0 %v1529_v7  ;;  %4527 = vmatprep.mubr.msk.bf16.mxu0 %vm4999_vm1, %v4998_v8 }
 0x395   :  { %v1237_v10 = vpack.c.bf16 %v1229_v49, %v1229_v49  ;;  %4537 = vmatprep.subr.bf16.mxu0 %v4998_v8 }
 0x396   :  { %v4915_v60 = vpop.eup %4914 }
 0x397   :  { %4522 = vmatmul.mubr.msk.bf16.vlgmr.msra.gmra.mxu1 %vm775_vm2, %v1237_v10  ;;  %v1230_v2 = vmul.f32 %v4915_v60, %v5340_v31 }
 0x398   :  { %4532 = vmatpush3.bf16.msra.mxu1 %v1575_v12  ;;  %4533 = vmatprep.mubr.msk.bf16.mxu1 %vm4999_vm1, %v4998_v8 }
 0x399   :  { %v1238_v54 = vpack.c.bf16 %v1230_v2, %v1230_v2  ;;  %4543 = vmatprep.subr.bf16.mxu1 %v4998_v8 }
 0x39a   :  { %v4917_v13 = vpop.eup %4916 }
 0x39b   :  { %4528 = vmatmul.mubr.msk.bf16.vlgmr.msra.gmra.mxu0 %vm775_vm2, %v1238_v54  ;;  %v1231_v14 = vmul.f32 %v4917_v13, %v5344_v34  ;;  %v1624_v34 = vld [vmem:[%s5890_s3 + $0xc] sm:$0xf] }
 0x39c   :  { %4539 = vmatprep.mubr.msk.bf16.mxu0 %vm4999_vm1, %v4998_v8  ;;  %4538 = vmatpush3.bf16.msra.mxu0 %v1629_v16  ;;  %v1770_v38 = vsel %vm1251_vm3, %v1624_v34, 0 }
 0x39d   :  { %v1239_v11 = vpack.c.bf16 %v1231_v14, %v1231_v14  ;;  %4549 = vmatprep.subr.bf16.mxu0 %v4998_v8 }
 0x39f   :  { %4534 = vmatmul.mubr.msk.bf16.vlgmr.msra.gmra.mxu1 %vm775_vm2, %v1239_v11 }
 0x3a0   :  { %4545 = vmatprep.mubr.msk.bf16.mxu1 %vm4999_vm1, %v4998_v8  ;;  %4544 = vmatpush3.bf16.msra.mxu1 %v1676_v19 }
 0x3a1   :  { %4555 = vmatprep.subr.bf16.mxu1 %v4998_v8 }
 0x43b   :  { %v1289_v20 = vpop.f32.mrf.mxu0 }
 0x43d   :  { %v4493_v17 = vpop.f32.mrf.mxu0 }
 0x43f   :  { %v1292_v22 = vpop.f32.mrf.mxu0  ;;  %v1335_v23 = vpop.f32.mrf.mxu1 }
 0x440   :  { %v1617_v25 = vpack.c.bf16 %v1335_v23, %v1289_v20 }
 0x441   :  { %v4494_v27 = vpop.f32.mrf.mxu0  ;;  %v4499_v28 = vpop.f32.mrf.mxu1 }
 0x442   :  { %4540 = vmatmul.mubr.msk.bf16.vlgmr.msra.gmra.mxu0 %vm775_vm2, %v1617_v25  ;;  %v4846_v27 = vld [vmem:[%s5891_s4 + $0x8] sm:$0xff]   ;;  %v4847_v28 = vld [vmem:[%s5891_s4] sm:$0xff]  }
 0x443   :  { %v1338_v29 = vpop.f32.mrf.mxu1  ;;  %4550 = vmatpush3.bf16.msra.mxu0 %v1723_v24  ;;  %4551 = vmatprep.mubr.msk.bf16.mxu0 %vm4999_vm1, %v4998_v8 }
 0x444   :  { %4561 = vmatprep.subr.bf16.mxu0 %v4998_v8  ;;  %v4848_v29 = vld [vmem:[%s5892_s5 + $0x18] sm:$0xff]  }
 0x445   :  { %v4500_v30 = vpop.f32.mrf.mxu1 }
 0x446   :  { %v4849_v30 = vld [vmem:[%s5892_s5 + $0x10] sm:$0xff]  }
 0x44b   :  { %v1381_v31 = vpop.f32.mrf.mxu0 }
 0x44d   :  { %v4505_v32 = vpop.f32.mrf.mxu0 }
 0x44f   :  { %v1384_v35 = vpop.f32.mrf.mxu0  ;;  %v1427_v36 = vpop.f32.mrf.mxu1 }
 0x450   :  { %v1618_v37 = vpack.c.bf16 %v1427_v36, %v1381_v31 }
 0x451   :  { %v4506_v40 = vpop.f32.mrf.mxu0  ;;  %v4511_v41 = vpop.f32.mrf.mxu1 }
 0x452   :  { %4546 = vmatmul.mubr.msk.bf16.vlgmr.msra.gmra.mxu1 %vm775_vm2, %v1618_v37 }
 0x453   :  { %v1430_v42 = vpop.f32.mrf.mxu1  ;;  %v1473_v43 = vpop.f32.mrf.mxu0  ;;  %4556 = vmatpush3.bf16.msra.mxu1 %v1770_v38  ;;  %4557 = vmatprep.mubr.msk.bf16.mxu1 %vm4999_vm1, %v4998_v8 }
 0x454   :  { %4569 = vmatprep.subr.bf16.mxu1 %v4998_v8  ;;  %v4035_v42 = vld [vmem:[%s5894_s7] ss:$0 sm:$0xff] }
 0x455   :  { %v4512_v45 = vpop.f32.mrf.mxu1  ;;  %v4517_v46 = vpop.f32.mrf.mxu0 }
 0x457   :  { %v1476_v47 = vpop.f32.mrf.mxu0  ;;  %v1519_v48 = vpop.f32.mrf.mxu1 }
 0x458   :  { %v1619_v51 = vpack.c.bf16 %v1519_v48, %v1473_v43  ;;  %v4850_v48 = vld [vmem:[%s5892_s5 + $0x8] sm:$0xff]  }
 0x459   :  { %v4518_v39 = vpop.f32.mrf.mxu0  ;;  %v4523_v50 = vpop.f32.mrf.mxu1 }
 0x45a   :  { %4552 = vmatmul.mubr.msk.bf16.vlgmr.msra.gmra.mxu0 %vm775_vm2, %v1619_v51  ;;  %v4851_v51 = vld [vmem:[%s5892_s5] sm:$0xff]  }
 0x45b   :  { %v1522_v52 = vpop.f32.mrf.mxu1  ;;  %v1565_v44 = vpop.f32.mrf.mxu0  ;;  %4565 = vmatprep.mubr.msk.bf16.mxu0 %vm4999_vm1, %v4998_v8  ;;  %4562 = vmatpush3.bf16.msra.mxu0 %v4846_v27  ;;  %v4864_v27 = vld [vmem:[%s5889_s2 + $0x118] sm:$0xff]  }
 0x45c   :  { %4563 = vmatprep.subr.bf16.mxu0 %v4998_v8 }
 0x45d   :  { %v4524_v53 = vpop.f32.mrf.mxu1  ;;  %v4529_v55 = vpop.f32.mrf.mxu0 }
 0x45f   :  { %v1568_v56 = vpop.f32.mrf.mxu0  ;;  %v1611_v57 = vpop.f32.mrf.mxu1  ;;  %4564 = vmatpush3.bf16.msra.mxu0 %v4847_v28  ;;  %v4865_v28 = vld [vmem:[%s5889_s2 + $0x148] sm:$0xff]  }
 0x460   :  { %v1620_v58 = vpack.c.bf16 %v1611_v57, %v1565_v44  ;;  %4581 = vmatprep.subr.bf16.mxu0 %v4998_v8 }
 0x461   :  { %v4530_v59 = vpop.f32.mrf.mxu0  ;;  %v4535_v61 = vpop.f32.mrf.mxu1 }
 0x462   :  { %4558 = vmatmul.mubr.msk.bf16.vlgmr.msra.gmra.mxu1 %vm775_vm2, %v1620_v58 }
 0x463   :  { %v1614_v62 = vpop.f32.mrf.mxu1  ;;  %4577 = vmatprep.mubr.msk.bf16.mxu1 %vm4999_vm1, %v4998_v8  ;;  %4570 = vmatpush3.bf16.msra.mxu1 %v4848_v29  ;;  %v4866_v29 = vld [vmem:[%s5889_s2 + $0x110] sm:$0xff]  }
 0x464   :  { %4571 = vmatprep.subr.bf16.mxu1 %v4998_v8 }
 0x465   :  { %v4536_v63 = vpop.f32.mrf.mxu1 }
 0x467   :  { %4572 = vmatpush3.bf16.msra.mxu1 %v4849_v30  ;;  %v4867_v30 = vld [vmem:[%s5889_s2 + $0x140] sm:$0xff]  }
 0x468   :  { %4573 = vmatprep.subr.bf16.mxu1 %v4998_v8 }
 0x46b   :  { %4574 = vmatpush3.bf16.msra.mxu1 %v4850_v48 }
 0x46c   :  { %4575 = vmatprep.subr.bf16.mxu1 %v4998_v8 }
 0x46f   :  { %4576 = vmatpush3.bf16.msra.mxu1 %v4851_v51 }
 0x470   :  { %4597 = vmatprep.subr.bf16.mxu1 %v4998_v8 }
 0x502   :  { %v1665_v0 = vpop.f32.mrf.mxu0 }
 0x504   :  { %v4541_v26 = vpop.f32.mrf.mxu0 }
 0x506   :  { %v1668_v1 = vpop.f32.mrf.mxu0 }
 0x508   :  { %v4542_v3 = vpop.f32.mrf.mxu0 }
 0x512   :  { %v1712_v4 = vpop.f32.mrf.mxu1 }
 0x513   :  { %v1813_v10 = vadd.f32 %v1712_v4, %v1665_v0  ;;  %v4852_v4 = vld [vmem:[%s5889_s2 + $0xc8] sm:$0xff]  }
 0x514   :  { %v4547_v33 = vpop.f32.mrf.mxu1 }
 0x515   :  { %v4853_v33 = vld [vmem:[%s5889_s2 + $0xe8] sm:$0xff]  }
 0x516   :  { %v1715_v5 = vpop.f32.mrf.mxu1 }
 0x517   :  { %v1814_v54 = vadd.f32 %v1715_v5, %v1668_v1  ;;  %v4854_v5 = vld [vmem:[%s5889_s2 + $0xc0] sm:$0xff]  }
 0x518   :  { %v4548_v6 = vpop.f32.mrf.mxu1 }
 0x519   :  { %v4855_v6 = vld [vmem:[%s5889_s2 + $0xe0] sm:$0xff]  }
 0x51a   :  { %v1759_v7 = vpop.f32.mrf.mxu0 }
 0x51b   :  { %v1815_v12 = vadd.f32 %v1813_v10, %v1759_v7 }
 0x51c   :  { %v4553_v9 = vpop.f32.mrf.mxu0 }
 0x51e   :  { %v1762_v49 = vpop.f32.mrf.mxu0 }
 0x51f   :  { %v1816_v11 = vadd.f32 %v1814_v54, %v1762_v49 }
 0x520   :  { %v4554_v60 = vpop.f32.mrf.mxu0 }
 0x522   :  { %v1806_v2 = vpop.f32.mrf.mxu1 }
 0x523   :  { %v1817_v13 = vadd.f32 %v1815_v12, %v1806_v2 }
 0x524   :  { %v4559_v14 = vpop.f32.mrf.mxu1 }
 0x525   :  { %v1819_v16 = vadd.f32 %v4966_v15, %v1817_v13  ;;  %v4045_v14 = vld [vmem:[%s5893_s6 + $0x1] ss:$0 sm:$0xff]  ;;  %s5000_s6 = smov [#allocation2]  }
 0x526   :  { %v1809_v18 = vpop.f32.mrf.mxu1  ;;  %s3967_s12 = sshll.u32 %s5000_s6, 4  ;;  %s3968_s12 = int_to_ptr.vmem [resolvable:$true] %s3967_s12 }
 0x527   :  { %v1818_v19 = vadd.f32 %v1816_v11, %v1809_v18  ;;  %v1822_v20 = vmul.f32 %v1819_v16, %v1819_v16  ;;  %v4856_v18 = vld [vmem:[%s5889_s2 + $0xd8] sm:$0xff]   ;;  %s4976_s13 = scalar_lea.vmem %s3968_s12, 256  ;;  %p4981_p1 = scmp.lt.s32.totalorder %s3968_s12, %s3968_s12 }
 0x528   :  { %v4560_v17 = vpop.f32.mrf.mxu1  ;;  %p4977_p0 = scmp.ne.s32.totalorder %s3968_s12, %s4976_s13  ;;  %p4982_p2 = scmp.lt.s32.totalorder %s4976_s13, %s4976_s13 }
 0x529   :  { %v1820_v22 = vadd.f32 %v4967_v21, %v1818_v19  ;;  %v1824_v23 = vsel %vm47_vm0, %v1822_v20, 0.0  ;;  %v4857_v19 = vld [vmem:[%s5889_s2 + $0x108] sm:$0xff]   ;;  %v4858_v17 = vld [vmem:[%s5889_s2 + $0xd0] sm:$0xff]   ;;  %v4859_v21 = vld [vmem:[%s5889_s2 + $0x100] sm:$0xff]  }
 0x52a   :  { %1825 = vadd.xlane.f32.xlu0 %v1824_v23  ;;  %v4861_v23 = vld [vmem:[%s5889_s2 + $0x128] sm:$0xff]   ;;  %p4983_p3 = por %p4982_p2, %p4981_p1 }
 0x52b   :  { %v1823_v25 = vmul.f32 %v1820_v22, %v1820_v22 }
 0x52c   :  { %p4984_p4 = pnand %p4983_p3, %p4977_p0 }
 0x52d   :  { %v1827_v24 = vsel %vm47_vm0, %v1823_v25, 0.0  ;;  %v4862_v25 = vld [vmem:[%s5889_s2 + $0xf0] sm:$0xff]  }
 0x52e   :  { %1828 = vadd.xlane.f32.xlu1 %v1827_v24  ;;  %v4863_v24 = vld [vmem:[%s5889_s2 + $0x120] sm:$0xff]  }
 0x5b3   :  { %v1826_v31 = vpop.xlane.xlu0 %1825 }
 0x5b4   :  { %v1830_v32 = vmul.f32 0.03125, %v1826_v31  ;;  %v4868_v31 = vld [vmem:[%s5889_s2 + $0x138] sm:$0xff]  }
 0x5b6   :  { %v1832_v34 = vadd.f32 1e-06, %v1830_v32  ;;  %v4869_v32 = vld [vmem:[%s5889_s2 + $0x168] sm:$0xff]  }
 0x5b7   :  { %v1829_v35 = vpop.xlane.xlu1 %1828 }
 0x5b8   :  { %4918 = vrsqrt.f32 %v1832_v34  ;;  %v1831_v36 = vmul.f32 0.03125, %v1829_v35  ;;  %v4870_v34 = vld [vmem:[%s5889_s2 + $0x130] sm:$0xff]   ;;  %v4871_v35 = vld [vmem:[%s5889_s2 + $0x160] sm:$0xff]  }
 0x5ba   :  { %v1833_v37 = vadd.f32 1e-06, %v1831_v36  ;;  %v4872_v36 = vld [vmem:[%s5889_s2 + $0x158] sm:$0xff]  }
 0x5bc   :  { %4920 = vrsqrt.f32 %v1833_v37  ;;  %v4873_v37 = vld [vmem:[%s5889_s2 + $0x150] sm:$0xff]  }
 0x5c5   :  { %v4919_v38 = vpop.eup %4918 }
 0x5c6   :  { %v1836_v40 = vmul.f32 %v4919_v38, %v1819_v16  ;;  %v4874_v38 = vld [vmem:[%s5889_s2 + $0x178] sm:$0xff]  }
 0x5c8   :  { %v1844_v45 = vmul.f32 %v4035_v42, %v1836_v40  ;;  %v4875_v40 = vld [vmem:[%s5889_s2 + $0x170] sm:$0xff]  }
 0x5c9   :  { %v4921_v41 = vpop.eup %4920 }
 0x5ca   :  { %v1837_v43 = vmul.f32 %v4921_v41, %v1820_v22 }
 0x5cc   :  { %v1845_v46 = vmul.f32 %v4035_v42, %v1837_v43 }
 0x5ce   :  { %v1846_v47 = vpack.c.bf16 %v1845_v46, %v1844_v45 }
 0x5d0   :  { %4566 = vmatmul.mubr.msk.bf16.vlgmr.msra.gmra.mxu0 %vm47_vm0, %v1846_v47 }
 0x5d1   :  { %4585 = vmatprep.mubr.msk.bf16.mxu0 %vm4999_vm1, %v4998_v8  ;;  %4582 = vmatpush3.bf16.msra.mxu0 %v4852_v4 }
 0x5d2   :  { %4583 = vmatprep.subr.bf16.mxu0 %v4998_v8 }
 0x5d5   :  { %4584 = vmatpush3.bf16.msra.mxu0 %v4854_v5 }
 0x5d6   :  { %4589 = vmatprep.subr.bf16.mxu0 %v4998_v8 }
 0x690   :  { %v1900_v39 = vpop.f32.mrf.mxu0 }
 0x691   :  { %v1907_v44 = vmax.f32 %v1900_v39, 0.0 }
 0x692   :  { %v4567_v50 = vpop.f32.mrf.mxu0 }
 0x694   :  { %v1903_v52 = vpop.f32.mrf.mxu0 }
 0x695   :  { %v1908_v53 = vmax.f32 %v1903_v52, 0.0 }
 0x696   :  { %v4568_v55 = vpop.f32.mrf.mxu0 }
 0x697   :  { %v1909_v56 = vpack.c.bf16 %v1908_v53, %v1907_v44 }
 0x699   :  { %4578 = vmatmul.mubr.msk.bf16.vlgmr.msra.gmra.mxu1 %vm1942_vm4, %v1909_v56 }
 0x69a   :  { %4601 = vmatprep.mubr.msk.bf16.mxu1 %vm4999_vm1, %v4998_v8  ;;  %4598 = vmatpush3.bf16.msra.mxu1 %v4853_v33 }
 0x69b   :  { %4599 = vmatprep.subr.bf16.mxu1 %v4998_v8 }
 0x69e   :  { %4600 = vmatpush3.bf16.msra.mxu1 %v4855_v6 }
 0x69f   :  { %4613 = vmatprep.subr.bf16.mxu1 %v4998_v8 }
 0x759   :  { %v1980_v57 = vpop.f32.mrf.mxu1 }
 0x75a   :  { %v5473_v58 = vadd.f32 %v1980_v57, %v1819_v16 }
 0x75b   :  { %v4579_v59 = vpop.f32.mrf.mxu1 }
 0x75c   :  { %v1991_v61 = vmul.f32 %v5473_v58, %v5473_v58 }
 0x75d   :  { %v1983_v62 = vpop.f32.mrf.mxu1 }
 0x75e   :  { %v5477_v63 = vadd.f32 %v1983_v62, %v1820_v22  ;;  %v1993_v0 = vsel %vm47_vm0, %v1991_v61, 0.0  ;;  %v4860_v22 = vld [vmem:[%s5889_s2 + $0xf8] sm:$0xff]  }
 0x75f   :  { %1994 = vadd.xlane.f32.xlu0 %v1993_v0  ;;  %v4580_v26 = vpop.f32.mrf.mxu1 }
 0x760   :  { %v1992_v1 = vmul.f32 %v5477_v63, %v5477_v63 }
 0x762   :  { %v1996_v3 = vsel %vm47_vm0, %v1992_v1, 0.0 }
 0x763   :  { %1997 = vadd.xlane.f32.xlu1 %v1996_v3 }
 0x7e8   :  { %v1995_v7 = vpop.xlane.xlu0 %1994 }
 0x7e9   :  { %v1999_v9 = vmul.f32 0.03125, %v1995_v7 }
 0x7eb   :  { %v2001_v49 = vadd.f32 1e-06, %v1999_v9 }
 0x7ec   :  { %v1998_v10 = vpop.xlane.xlu1 %1997 }
 0x7ed   :  { %4922 = vrsqrt.f32 %v2001_v49  ;;  %v2000_v60 = vmul.f32 0.03125, %v1998_v10 }
 0x7ef   :  { %v2002_v12 = vadd.f32 1e-06, %v2000_v60 }
 0x7f1   :  { %4924 = vrsqrt.f32 %v2002_v12 }
 0x7fa   :  { %v4923_v2 = vpop.eup %4922 }
 0x7fb   :  { %v2005_v54 = vmul.f32 %v4923_v2, %v5473_v58 }
 0x7fd   :  { %v2013_v15 = vmul.f32 %v4045_v14, %v2005_v54 }
 0x7fe   :  { %v4925_v13 = vpop.eup %4924 }
 0x7ff   :  { %v2006_v11 = vmul.f32 %v4925_v13, %v5477_v63 }
 0x801   :  { %v2014_v16 = vmul.f32 %v4045_v14, %v2006_v11 }
 0x803   :  { %v5510_v20 = vpack.c.bf16 %v2014_v16, %v2013_v15 }
 0x805   :  { %4586 = vmatmul.mubr.msk.bf16.vlgmr.msra.gmra.mxu0 %vm47_vm0, %v5510_v20  ;;  %4602 = vmatmul.mubr.msk.bf16.vlgmr.msra.gmra.mxu1 %vm47_vm0, %v5510_v20 }
 0x806   :  { %4590 = vmatpush3.bf16.msra.mxu0 %v4856_v18  ;;  %4614 = vmatpush3.bf16.msra.mxu1 %v4857_v19 }
 0x807   :  { %4591 = vmatprep.subr.bf16.mxu0 %v4998_v8  ;;  %4615 = vmatprep.subr.bf16.mxu1 %v4998_v8 }
 0x808   :  { %4593 = vmatprep.mubr.msk.bf16.mxu0 %vm4999_vm1, %v4998_v8  ;;  %4617 = vmatprep.mubr.msk.bf16.mxu1 %vm4999_vm1, %v4998_v8 }
 0x80a   :  { %4592 = vmatpush3.bf16.msra.mxu0 %v4858_v17  ;;  %4616 = vmatpush3.bf16.msra.mxu1 %v4859_v21 }
 0x80b   :  { %4605 = vmatprep.subr.bf16.mxu0 %v4998_v8  ;;  %4629 = vmatprep.subr.bf16.mxu1 %v4998_v8 }
 0x80d   :  { %4594 = vmatmul.mubr.msk.bf16.vlgmr.msra.gmra.mxu0 %vm47_vm0, %v5510_v20  ;;  %4618 = vmatmul.mubr.msk.bf16.vlgmr.msra.gmra.mxu1 %vm47_vm0, %v5510_v20 }
 0x80e   :  { %4606 = vmatpush3.bf16.msra.mxu0 %v4860_v22  ;;  %4630 = vmatpush3.bf16.msra.mxu1 %v4861_v23 }
 0x80f   :  { %4607 = vmatprep.subr.bf16.mxu0 %v4998_v8  ;;  %4631 = vmatprep.subr.bf16.mxu1 %v4998_v8 }
 0x810   :  { %4609 = vmatprep.mubr.msk.bf16.mxu0 %vm4999_vm1, %v4998_v8  ;;  %4633 = vmatprep.mubr.msk.bf16.mxu1 %vm4999_vm1, %v4998_v8 }
 0x812   :  { %4608 = vmatpush3.bf16.msra.mxu0 %v4862_v25  ;;  %4632 = vmatpush3.bf16.msra.mxu1 %v4863_v24 }
 0x813   :  { %4621 = vmatprep.subr.bf16.mxu0 %v4998_v8  ;;  %4645 = vmatprep.subr.bf16.mxu1 %v4998_v8 }
 0x815   :  { %4610 = vmatmul.mubr.msk.bf16.vlgmr.msra.gmra.mxu0 %vm47_vm0, %v5510_v20  ;;  %4634 = vmatmul.mubr.msk.bf16.vlgmr.msra.gmra.mxu1 %vm47_vm0, %v5510_v20 }
 0x816   :  { %4622 = vmatpush3.bf16.msra.mxu0 %v4864_v27  ;;  %4646 = vmatpush3.bf16.msra.mxu1 %v4865_v28 }
 0x817   :  { %4623 = vmatprep.subr.bf16.mxu0 %v4998_v8  ;;  %4647 = vmatprep.subr.bf16.mxu1 %v4998_v8 }
 0x818   :  { %4625 = vmatprep.mubr.msk.bf16.mxu0 %vm4999_vm1, %v4998_v8  ;;  %4649 = vmatprep.mubr.msk.bf16.mxu1 %vm4999_vm1, %v4998_v8 }
 0x81a   :  { %4624 = vmatpush3.bf16.msra.mxu0 %v4866_v29  ;;  %4648 = vmatpush3.bf16.msra.mxu1 %v4867_v30 }
 0x81b   :  { %4637 = vmatprep.subr.bf16.mxu0 %v4998_v8  ;;  %4661 = vmatprep.subr.bf16.mxu1 %v4998_v8 }
 0x81d   :  { %4626 = vmatmul.mubr.msk.bf16.vlgmr.msra.gmra.mxu0 %vm47_vm0, %v5510_v20  ;;  %4650 = vmatmul.mubr.msk.bf16.vlgmr.msra.gmra.mxu1 %vm47_vm0, %v5510_v20 }
 0x81e   :  { %4638 = vmatpush3.bf16.msra.mxu0 %v4868_v31  ;;  %4662 = vmatpush3.bf16.msra.mxu1 %v4869_v32 }
 0x81f   :  { %4639 = vmatprep.subr.bf16.mxu0 %v4998_v8  ;;  %4663 = vmatprep.subr.bf16.mxu1 %v4998_v8 }
 0x820   :  { %4641 = vmatprep.mubr.msk.bf16.mxu0 %vm4999_vm1, %v4998_v8  ;;  %4665 = vmatprep.mubr.msk.bf16.mxu1 %vm4999_vm1, %v4998_v8 }
 0x822   :  { %4640 = vmatpush3.bf16.msra.mxu0 %v4870_v34  ;;  %4664 = vmatpush3.bf16.msra.mxu1 %v4871_v35 }
 0x823   :  { %4653 = vmatprep.subr.bf16.mxu0 %v4998_v8  ;;  %4677 = vmatprep.subr.bf16.mxu1 %v4998_v8 }
 0x825   :  { %4642 = vmatmul.mubr.msk.bf16.vlgmr.msra.gmra.mxu0 %vm47_vm0, %v5510_v20  ;;  %4666 = vmatmul.mubr.msk.bf16.vlgmr.msra.gmra.mxu1 %vm47_vm0, %v5510_v20 }
 0x826   :  { %4654 = vmatpush3.bf16.msra.mxu0 %v4872_v36  ;;  %4657 = vmatprep.mubr.msk.bf16.mxu0 %vm4999_vm1, %v4998_v8 }
 0x827   :  { %4655 = vmatprep.subr.bf16.mxu0 %v4998_v8  ;;  %4679 = vmatprep.mubr.msk.bf16.mxu1 %vm4999_vm1, %v4998_v8 }
 0x82a   :  { %4656 = vmatpush3.bf16.msra.mxu0 %v4873_v37 }
 0x82b   :  { %4669 = vmatprep.subr.bf16.mxu0 %v4998_v8 }
 0x82d   :  { %4658 = vmatmul.mubr.msk.bf16.vlgmr.msra.gmra.mxu0 %vm47_vm0, %v5510_v20 }
 0x82e   :  { %4670 = vmatpush3.bf16.msra.mxu0 %v4874_v38  ;;  %4673 = vmatprep.mubr.msk.bf16.mxu0 %vm4999_vm1, %v4998_v8 }
 0x82f   :  { %4671 = vmatprep.subr.bf16.mxu0 %v4998_v8 }
 0x832   :  { %4672 = vmatpush3.bf16.msra.mxu0 %v4875_v40 }
 0x833   :  { %4683 = vmatprep.subr.bf16.mxu0 %v4998_v8 }
 0x835   :  { %4674 = vmatmul.mubr.msk.bf16.vlgmr.msra.gmra.mxu0 %vm47_vm0, %v5510_v20 }
 0x836   :  { %4685 = vmatprep.mubr.msk.bf16.mxu0 %vm4999_vm1, %v4998_v8 }
 0x8c5   :  { %v2114_v41 = vpop.f32.mrf.mxu0  ;;  %v5634_v42 = vpop.f32.mrf.mxu1 }
 0x8c6   :  { %v2704_v3 = vpack.c.bf16 %v2114_v41, %v2114_v41  ;;  %v2708_v37 = vpack.c.bf16 %v5634_v42, %v5634_v42 }
 0x8c7   :  { %v4587_v43 = vpop.f32.mrf.mxu0  ;;  %v4603_v45 = vpop.f32.mrf.mxu1 }
 0x8c9   :  { %v2117_v46 = vpop.f32.mrf.mxu0  ;;  %v5636_v47 = vpop.f32.mrf.mxu1 }
 0x8ca   :  { %v2705_v7 = vpack.c.bf16 %v2117_v46, %v2117_v46  ;;  %v2709_v45 = vpack.c.bf16 %v5636_v47, %v5636_v47 }
 0x8cb   :  { %v4588_v48 = vpop.f32.mrf.mxu0  ;;  %v4604_v51 = vpop.f32.mrf.mxu1 }
 0x8cd   :  { %v2167_v39 = vpop.f32.mrf.mxu0  ;;  %v2326_v50 = vpop.f32.mrf.mxu1 }
 0x8ce   :  { %v2712_v52 = vpack.c.bf16 %v2326_v50, %v2326_v50  ;;  %v2706_v22 = vpack.c.bf16 %v2167_v39, %v2167_v39 }
 0x8cf   :  { %v4595_v44 = vpop.f32.mrf.mxu0  ;;  %v4619_v53 = vpop.f32.mrf.mxu1 }
 0x8d0   :  { %v2724_v55 = vsel %vm775_vm2, %v2712_v52, 0 }
 0x8d1   :  { %v2170_v56 = vpop.f32.mrf.mxu0  ;;  %v2329_v57 = vpop.f32.mrf.mxu1  ;;  %4678 = vmatpush3.bf16.xpose.msra.mxu1 %v2724_v55 }
 0x8d2   :  { %v2713_v59 = vpack.c.bf16 %v2329_v57, %v2329_v57  ;;  %4689 = vmatprep.subr.bf16.mxu1 %v4998_v8  ;;  %v2707_v30 = vpack.c.bf16 %v2170_v56, %v2170_v56 }
 0x8d3   :  { %v4596_v61 = vpop.f32.mrf.mxu0  ;;  %v4620_v62 = vpop.f32.mrf.mxu1 }
 0x8d4   :  { %v2770_v0 = vsel %vm775_vm2, %v2713_v59, 0  ;;  %v4968_v59 = vld [vmem:[%s5888_s1] sm:$0xff] }
 0x8d5   :  { %v5641_v26 = vpop.f32.mrf.mxu0  ;;  %v2432_v1 = vpop.f32.mrf.mxu1  ;;  %4684 = vmatpush3.bf16.xpose.msra.mxu0 %v2770_v0 }
 0x8d6   :  { %4695 = vmatprep.subr.bf16.mxu0 %v4998_v8  ;;  %v2716_v19 = vpack.c.bf16 %v2432_v1, %v2432_v1  ;;  %v2710_v39 = vpack.c.bf16 %v5641_v26, %v5641_v26 }
 0x8d7   :  { %v4611_v4 = vpop.f32.mrf.mxu0  ;;  %v4635_v33 = vpop.f32.mrf.mxu1 }
 0x8d8   :  { %4680 = vmatmul.mubr.msk.bf16.vlgmr.msra.gmra.mxu1 %vm775_vm2, %v2704_v3  ;;  %v2908_v24 = vsel %vm775_vm2, %v2716_v19, 0  ;;  %v4969_v3 = vld [vmem:[%s5888_s1 + $0x8] sm:$0xff] }
 0x8d9   :  { %v5645_v5 = vpop.f32.mrf.mxu0  ;;  %v2435_v6 = vpop.f32.mrf.mxu1  ;;  %4691 = vmatprep.mubr.msk.bf16.mxu1 %vm4999_vm1, %v4998_v8 }
 0x8da   :  { %v2717_v27 = vpack.c.bf16 %v2435_v6, %v2435_v6  ;;  %v2711_v53 = vpack.c.bf16 %v5645_v5, %v5645_v5 }
 0x8db   :  { %v4612_v9 = vpop.f32.mrf.mxu0  ;;  %v4636_v49 = vpop.f32.mrf.mxu1 }
 0x8dc   :  { %4686 = vmatmul.mubr.msk.bf16.vlgmr.msra.gmra.mxu0 %vm775_vm2, %v2705_v7  ;;  %v2954_v34 = vsel %vm775_vm2, %v2717_v27, 0 }
 0x8dd   :  { %v2379_v10 = vpop.f32.mrf.mxu0  ;;  %v2538_v60 = vpop.f32.mrf.mxu1  ;;  %4697 = vmatprep.mubr.msk.bf16.mxu0 %vm4999_vm1, %v4998_v8 }
 0x8de   :  { %v2714_v12 = vpack.c.bf16 %v2379_v10, %v2379_v10  ;;  %v3184_v46 = vpack.c.bf16 %v2538_v60, %v2538_v60  ;;  %v4970_v10 = vld [vmem:[%s5888_s1 + $0x10] sm:$0xff] }
 0x8df   :  { %v4627_v2 = vpop.f32.mrf.mxu0  ;;  %v4651_v54 = vpop.f32.mrf.mxu1 }
 0x8e0   :  { %v2816_v13 = vsel %vm775_vm2, %v2714_v12, 0  ;;  %v3196_v50 = vsel %vm1251_vm3, %v3184_v46, 0 }
 0x8e1   :  { %v2382_v14 = vpop.f32.mrf.mxu0  ;;  %v5653_v11 = vpop.f32.mrf.mxu1  ;;  %4690 = vmatpush3.bf16.xpose.msra.mxu1 %v2816_v13 }
 0x8e2   :  { %v2715_v15 = vpack.c.bf16 %v2382_v14, %v2382_v14  ;;  %4701 = vmatprep.subr.bf16.mxu1 %v4998_v8  ;;  %v3185_v52 = vpack.c.bf16 %v5653_v11, %v5653_v11  ;;  %v4971_v14 = vld [vmem:[%s5888_s1 + $0x18] sm:$0xff] }
 0x8e3   :  { %v4628_v16 = vpop.f32.mrf.mxu0  ;;  %v4652_v18 = vpop.f32.mrf.mxu1 }
 0x8e4   :  { %v2862_v20 = vsel %vm775_vm2, %v2715_v15, 0  ;;  %v3242_v56 = vsel %vm1251_vm3, %v3185_v52, 0 }
 0x8e5   :  { %v2485_v17 = vpop.f32.mrf.mxu0  ;;  %v5657_v21 = vpop.f32.mrf.mxu1  ;;  %4696 = vmatpush3.bf16.xpose.msra.mxu0 %v2862_v20 }
 0x8e6   :  { %4707 = vmatprep.subr.bf16.mxu0 %v4998_v8  ;;  %v2718_v35 = vpack.c.bf16 %v2485_v17, %v2485_v17  ;;  %v4972_v17 = vld [vmem:[%s5888_s1 + $0x20] sm:$0xff] }
 0x8e7   :  { %v4643_v23 = vpop.f32.mrf.mxu0  ;;  %v4667_v25 = vpop.f32.mrf.mxu1 }
 0x8e8   :  { %4692 = vmatmul.mubr.msk.bf16.vlgmr.msra.gmra.mxu1 %vm775_vm2, %v2706_v22  ;;  %v3000_v40 = vsel %vm775_vm2, %v2718_v35, 0 }
 0x8e9   :  { %v2488_v28 = vpop.f32.mrf.mxu0  ;;  %v5662_v29 = vpop.f32.mrf.mxu1  ;;  %4702 = vmatpush3.bf16.xpose.msra.mxu1 %v2908_v24  ;;  %4703 = vmatprep.mubr.msk.bf16.mxu1 %vm4999_vm1, %v4998_v8 }
 0x8ea   :  { %4713 = vmatprep.subr.bf16.mxu1 %v4998_v8  ;;  %v2719_v41 = vpack.c.bf16 %v2488_v28, %v2488_v28 }
 0x8eb   :  { %v4644_v31 = vpop.f32.mrf.mxu0  ;;  %v4668_v32 = vpop.f32.mrf.mxu1 }
 0x8ec   :  { %4698 = vmatmul.mubr.msk.bf16.vlgmr.msra.gmra.mxu0 %vm775_vm2, %v2707_v30  ;;  %v3046_v48 = vsel %vm775_vm2, %v2719_v41, 0  ;;  %v4973_v30 = vld [vmem:[%s5888_s1 + $0x28] sm:$0xff] }
 0x8ed   :  { %v5669_v36 = vpop.f32.mrf.mxu0  ;;  %4708 = vmatpush3.bf16.xpose.msra.mxu0 %v2954_v34  ;;  %4709 = vmatprep.mubr.msk.bf16.mxu0 %vm4999_vm1, %v4998_v8 }
 0x8ee   :  { %4719 = vmatprep.subr.bf16.mxu0 %v4998_v8 }
 0x8ef   :  { %v4659_v38 = vpop.f32.mrf.mxu0 }
 0x8f0   :  { %4704 = vmatmul.mubr.msk.bf16.vlgmr.msra.gmra.mxu1 %vm775_vm2, %v2708_v37 }
 0x8f1   :  { %v5678_v43 = vpop.f32.mrf.mxu0  ;;  %4714 = vmatpush3.bf16.xpose.msra.mxu1 %v3000_v40  ;;  %4715 = vmatprep.mubr.msk.bf16.mxu1 %vm4999_vm1, %v4998_v8  ;;  %v4974_v40 = vld [vmem:[%s5888_s1 + $0x30] sm:$0xff] }
 0x8f2   :  { %4725 = vmatprep.subr.bf16.mxu1 %v4998_v8 }
 0x8f3   :  { %v4660_v42 = vpop.f32.mrf.mxu0 }
 0x8f4   :  { %4710 = vmatmul.mubr.msk.bf16.vlgmr.msra.gmra.mxu0 %vm775_vm2, %v2709_v45 }
 0x8f5   :  { %v5687_v51 = vpop.f32.mrf.mxu0  ;;  %4720 = vmatpush3.bf16.xpose.msra.mxu0 %v3046_v48  ;;  %4721 = vmatprep.mubr.msk.bf16.mxu0 %vm4999_vm1, %v4998_v8 }
 0x8f6   :  { %4731 = vmatprep.subr.bf16.mxu0 %v4998_v8 }
 0x8f7   :  { %v4675_v47 = vpop.f32.mrf.mxu0 }
 0x8f8   :  { %4716 = vmatmul.mubr.msk.bf16.vlgmr.msra.gmra.mxu1 %vm775_vm2, %v2710_v39  ;;  %v4975_v47 = vld [vmem:[%s5888_s1 + $0x38] sm:$0xff] }
 0x8f9   :  { %v5698_v44 = vpop.f32.mrf.mxu0  ;;  %4726 = vmatpush3.bf16.msra.mxu1 %v3196_v50  ;;  %4727 = vmatprep.mubr.msk.bf16.mxu1 %vm4999_vm1, %v4998_v8 }
 0x8fa   :  { %4737 = vmatprep.subr.bf16.mxu1 %v4998_v8 }
 0x8fb   :  { %v4676_v55 = vpop.f32.mrf.mxu0 }
 0x8fc   :  { %4722 = vmatmul.mubr.msk.bf16.vlgmr.msra.gmra.mxu0 %vm775_vm2, %v2711_v53 }
 0x8fd   :  { %4732 = vmatpush3.bf16.msra.mxu0 %v3242_v56  ;;  %4733 = vmatprep.mubr.msk.bf16.mxu0 %vm4999_vm1, %v4998_v8 }
 0x8fe   :  { %4743 = vmatprep.subr.bf16.mxu0 %v4998_v8 }
 0x998   :  { %v2760_v57 = vpop.f32.mrf.mxu1 }
 0x999   :  { %v5713_v61 = vadd.f32 %v4968_v59, %v2760_v57 }
 0x99a   :  { %v4681_v62 = vpop.f32.mrf.mxu1 }
 0x99b   :  { %v3088_v0 = vsel %vm775_vm2, %v5713_v61, -inf }
 0x99c   :  { %v2806_v26 = vpop.f32.mrf.mxu0  ;;  %3089 = vmax.xlane.f32.xlu0 %v3088_v0  ;;  %v2763_v1 = vpop.f32.mrf.mxu1 }
 0x99d   :  { %v2807_v4 = vadd.f32 %v4969_v3, %v2806_v26 }
 0x99e   :  { %v4682_v33 = vpop.f32.mrf.mxu1  ;;  %v4687_v5 = vpop.f32.mrf.mxu0 }
 0x99f   :  { %v3091_v6 = vsel %vm775_vm2, %v2807_v4, -inf }
 0x9a0   :  { %3092 = vmax.xlane.f32.xlu1 %v3091_v6  ;;  %v2809_v7 = vpop.f32.mrf.mxu0 }
 0x9a2   :  { %v4688_v9 = vpop.f32.mrf.mxu0 }
 0x9a8   :  { %v2852_v49 = vpop.f32.mrf.mxu1 }
 0x9a9   :  { %v2853_v60 = vadd.f32 %v4970_v10, %v2852_v49 }
 0x9aa   :  { %v4693_v12 = vpop.f32.mrf.mxu1 }
 0x9ab   :  { %v3094_v2 = vsel %vm775_vm2, %v2853_v60, -inf }
 0x9ac   :  { %v2898_v54 = vpop.f32.mrf.mxu0  ;;  %3095 = vmax.xlane.f32.xlu0 %v3094_v2  ;;  %v2855_v13 = vpop.f32.mrf.mxu1 }
 0x9ad   :  { %v2899_v11 = vadd.f32 %v4971_v14, %v2898_v54 }
 0x9ae   :  { %v4694_v15 = vpop.f32.mrf.mxu1  ;;  %v4699_v16 = vpop.f32.mrf.mxu0 }
 0x9af   :  { %v3097_v18 = vsel %vm775_vm2, %v2899_v11, -inf }
 0x9b0   :  { %3098 = vmax.xlane.f32.xlu1 %v3097_v18  ;;  %v2901_v19 = vpop.f32.mrf.mxu0  ;;  %v2944_v20 = vpop.f32.mrf.mxu1 }
 0x9b1   :  { %v2945_v22 = vadd.f32 %v4972_v17, %v2944_v20 }
 0x9b2   :  { %v4700_v23 = vpop.f32.mrf.mxu0  ;;  %v4705_v25 = vpop.f32.mrf.mxu1 }
 0x9b3   :  { %v3100_v24 = vsel %vm775_vm2, %v2945_v22, -inf }
 0x9b4   :  { %v2990_v27 = vpop.f32.mrf.mxu0  ;;  %3101 = vmax.xlane.f32.xlu0 %v3100_v24  ;;  %v2947_v28 = vpop.f32.mrf.mxu1 }
 0x9b5   :  { %v2991_v31 = vadd.f32 %v4973_v30, %v2990_v27 }
 0x9b6   :  { %v4706_v32 = vpop.f32.mrf.mxu1  ;;  %v4711_v34 = vpop.f32.mrf.mxu0 }
 0x9b7   :  { %v3103_v35 = vsel %vm775_vm2, %v2991_v31, -inf }
 0x9b8   :  { %3104 = vmax.xlane.f32.xlu1 %v3103_v35  ;;  %v2993_v37 = vpop.f32.mrf.mxu0  ;;  %v3036_v38 = vpop.f32.mrf.mxu1 }
 0x9b9   :  { %v3037_v41 = vadd.f32 %v4974_v40, %v3036_v38 }
 0x9ba   :  { %v4712_v45 = vpop.f32.mrf.mxu0  ;;  %v4717_v42 = vpop.f32.mrf.mxu1 }
 0x9bb   :  { %v3106_v46 = vsel %vm775_vm2, %v3037_v41, -inf  ;;  %v3186_v45 = vpack.c.bf16 %v5669_v36, %v5669_v36 }
 0x9bc   :  { %v3082_v48 = vpop.f32.mrf.mxu0  ;;  %3107 = vmax.xlane.f32.xlu0 %v3106_v46  ;;  %v3039_v39 = vpop.f32.mrf.mxu1 }
 0x9bd   :  { %v3083_v50 = vadd.f32 %v4975_v47, %v3082_v48  ;;  %v3288_v47 = vsel %vm1251_vm3, %v3186_v45, 0 }
 0x9be   :  { %v4718_v52 = vpop.f32.mrf.mxu1  ;;  %v4723_v53 = vpop.f32.mrf.mxu0 }
 0x9bf   :  { %v3109_v55 = vsel %vm775_vm2, %v3083_v50, -inf }
 0x9c0   :  { %3110 = vmax.xlane.f32.xlu1 %v3109_v55  ;;  %v3085_v56 = vpop.f32.mrf.mxu0 }
 0x9c2   :  { %v4724_v57 = vpop.f32.mrf.mxu0 }
 0xa25   :  { %v3090_v59 = vpop.xlane.xlu0 %3089 }
 0xa26   :  { %v3112_v62 = vsub.f32 %v5713_v61, %v3090_v59  ;;  %v3188_v59 = vpack.c.bf16 %v5657_v21, %v5657_v21 }
 0xa28   :  { %v3120_v0 = vmul.f32 1.442695, %v3112_v62 }
 0xa29   :  { %v3093_v26 = vpop.xlane.xlu1 %3092 }
 0xa2a   :  { %4926 = vpow2.f32 %v3120_v0  ;;  %v3113_v1 = vsub.f32 %v2807_v4, %v3093_v26 }
 0xa2c   :  { %v3122_v3 = vmul.f32 1.442695, %v3113_v1 }
 0xa2e   :  { %4928 = vpow2.f32 %v3122_v3  ;;  %v3380_v3 = vsel %vm1251_vm3, %v3188_v59, 0 }
 0xa35   :  { %v3096_v33 = vpop.xlane.xlu0 %3095 }
 0xa36   :  { %v3114_v5 = vsub.f32 %v2853_v60, %v3096_v33  ;;  %v3189_v33 = vpack.c.bf16 %v5662_v29, %v5662_v29 }
 0xa37   :  { %v4927_v6 = vpop.eup %4926 }
 0xa38   :  { %v3124_v7 = vmul.f32 1.442695, %v3114_v5  ;;  %v3136_v9 = vsel %vm775_vm2, %v4927_v6, 0.0 }
 0xa39   :  { %v3099_v49 = vpop.xlane.xlu1 %3098  ;;  %3137 = vadd.xlane.f32.xlu0 %v3136_v9  ;;  %v3426_v9 = vsel %vm1251_vm3, %v3189_v33, 0 }
 0xa3a   :  { %4930 = vpow2.f32 %v3124_v7  ;;  %v3115_v10 = vsub.f32 %v2899_v11, %v3099_v49  ;;  %v3190_v49 = vpack.c.bf16 %v5687_v51, %v5687_v51 }
 0xa3b   :  { %v4929_v12 = vpop.eup %4928 }
 0xa3c   :  { %v3126_v2 = vmul.f32 1.442695, %v3115_v10  ;;  %v3139_v61 = vsel %vm775_vm2, %v4929_v12, 0.0 }
 0xa3d   :  { %3140 = vadd.xlane.f32.xlu1 %v3139_v61  ;;  %v3102_v54 = vpop.xlane.xlu0 %3101  ;;  %v3191_v61 = vpack.c.bf16 %v5698_v44, %v5698_v44 }
 0xa3e   :  { %4932 = vpow2.f32 %v3126_v2  ;;  %v3116_v4 = vsub.f32 %v2945_v22, %v3102_v54  ;;  %v3472_v2 = vsel %vm1251_vm3, %v3190_v49, 0 }
 0xa40   :  { %v3128_v13 = vmul.f32 1.442695, %v3116_v4 }
 0xa41   :  { %v3105_v14 = vpop.xlane.xlu1 %3104 }
 0xa42   :  { %4934 = vpow2.f32 %v3128_v13  ;;  %v3117_v60 = vsub.f32 %v2991_v31, %v3105_v14  ;;  %v3518_v13 = vsel %vm1251_vm3, %v3191_v61, 0 }
 0xa44   :  { %v3130_v15 = vmul.f32 1.442695, %v3117_v60 }
 0xa45   :  { %v3108_v16 = vpop.xlane.xlu0 %3107 }
 0xa46   :  { %4936 = vpow2.f32 %v3130_v15  ;;  %v3118_v18 = vsub.f32 %v3037_v41, %v3108_v16 }
 0xa47   :  { %v4931_v19 = vpop.eup %4930 }
 0xa48   :  { %v3132_v20 = vmul.f32 1.442695, %v3118_v18  ;;  %v3142_v11 = vsel %vm775_vm2, %v4931_v19, 0.0  ;;  %v4146_v18 = vld [vmem:[%s5890_s3 + $0x10] sm:$0xf] }
 0xa49   :  { %v3111_v17 = vpop.xlane.xlu1 %3110  ;;  %3143 = vadd.xlane.f32.xlu0 %v3142_v11 }
 0xa4a   :  { %4938 = vpow2.f32 %v3132_v20  ;;  %v3119_v23 = vsub.f32 %v3083_v50, %v3111_v17  ;;  %v3187_v50 = vpack.c.bf16 %v5678_v43, %v5678_v43  ;;  %v4147_v20 = vld [vmem:[%s5890_s3 + $0x14] sm:$0xf] }
 0xa4b   :  { %v4933_v25 = vpop.eup %4932  ;;  %v3620_v11 = vsel %vm1251_vm3, %v4147_v20, 0 }
 0xa4c   :  { %v3134_v24 = vmul.f32 1.442695, %v3119_v23  ;;  %v3145_v22 = vsel %vm775_vm2, %v4933_v25, 0.0  ;;  %v3334_v55 = vsel %vm1251_vm3, %v3187_v50, 0 }
 0xa4d   :  { %3146 = vadd.xlane.f32.xlu1 %v3145_v22 }
 0xa4e   :  { %4940 = vpow2.f32 %v3134_v24 }
 0xa4f   :  { %v4935_v27 = vpop.eup %4934 }
 0xa50   :  { %v3148_v28 = vsel %vm775_vm2, %v4935_v27, 0.0 }
 0xa51   :  { %3149 = vadd.xlane.f32.xlu0 %v3148_v28 }
 0xa53   :  { %v5751_v30 = vpop.eup %4936 }
 0xa54   :  { %v3151_v31 = vsel %vm775_vm2, %v5751_v30, 0.0 }
 0xa55   :  { %3152 = vadd.xlane.f32.xlu1 %v3151_v31 }
 0xa57   :  { %v5755_v32 = vpop.eup %4938 }
 0xa58   :  { %v3154_v34 = vsel %vm775_vm2, %v5755_v32, 0.0 }
 0xa59   :  { %3155 = vadd.xlane.f32.xlu0 %v3154_v34 }
 0xa5b   :  { %v5759_v35 = vpop.eup %4940 }
 0xa5c   :  { %v3157_v37 = vsel %vm775_vm2, %v5759_v35, 0.0 }
 0xa5d   :  { %3158 = vadd.xlane.f32.xlu1 %v3157_v37 }
 0xac2   :  { %v3138_v38 = vpop.xlane.xlu0 %3137 }
 0xac3   :  { %4942 = vrcp.f32 %v3138_v38  ;;  %v4149_v38 = vld [vmem:[%s5890_s3 + $0x1c] sm:$0xf] }
 0xac6   :  { %v3141_v40 = vpop.xlane.xlu1 %3140 }
 0xac7   :  { %4944 = vrcp.f32 %v3141_v40 }
 0xad0   :  { %v4943_v41 = vpop.eup %4942 }
 0xad1   :  { %v3168_v42 = vmul.f32 %v4943_v41, %v4927_v6 }
 0xad2   :  { %v3144_v46 = vpop.xlane.xlu0 %3143 }
 0xad3   :  { %4946 = vrcp.f32 %v3144_v46  ;;  %v3176_v48 = vpack.c.bf16 %v3168_v42, %v3168_v42  ;;  %v3714_v42 = vsel %vm1251_vm3, %v4149_v38, 0 }
 0xad4   :  { %v4945_v39 = vpop.eup %4944 }
 0xad5   :  { %4728 = vmatmul.mubr.msk.bf16.vlgmr.msra.gmra.mxu1 %vm775_vm2, %v3176_v48  ;;  %v3169_v52 = vmul.f32 %v4945_v39, %v4929_v12 }
 0xad6   :  { %4738 = vmatpush3.bf16.msra.mxu1 %v3288_v47  ;;  %v3147_v53 = vpop.xlane.xlu1 %3146  ;;  %4739 = vmatprep.mubr.msk.bf16.mxu1 %vm4999_vm1, %v4998_v8 }
 0xad7   :  { %4948 = vrcp.f32 %v3147_v53  ;;  %v3177_v36 = vpack.c.bf16 %v3169_v52, %v3169_v52  ;;  %4749 = vmatprep.subr.bf16.mxu1 %v4998_v8 }
 0xad9   :  { %4734 = vmatmul.mubr.msk.bf16.vlgmr.msra.gmra.mxu0 %vm775_vm2, %v3177_v36 }
 0xada   :  { %4744 = vmatpush3.bf16.msra.mxu0 %v3334_v55  ;;  %v3150_v56 = vpop.xlane.xlu0 %3149  ;;  %4745 = vmatprep.mubr.msk.bf16.mxu0 %vm4999_vm1, %v4998_v8 }
 0xadb   :  { %4950 = vrcp.f32 %v3150_v56  ;;  %4755 = vmatprep.subr.bf16.mxu0 %v4998_v8 }
 0xade   :  { %v3153_v43 = vpop.xlane.xlu1 %3152 }
 0xadf   :  { %4952 = vrcp.f32 %v3153_v43 }
 0xae0   :  { %v4947_v57 = vpop.eup %4946 }
 0xae1   :  { %v3170_v62 = vmul.f32 %v4947_v57, %v4931_v19  ;;  %v3573_v19 = vsel %vm1251_vm3, %v4146_v18, 0 }
 0xae2   :  { %v3156_v0 = vpop.xlane.xlu0 %3155 }
 0xae3   :  { %v3178_v26 = vpack.c.bf16 %v3170_v62, %v3170_v62  ;;  %4954 = vrcp.f32 %v3156_v0 }
 0xae4   :  { %v4949_v1 = vpop.eup %4948 }
 0xae5   :  { %v3171_v5 = vmul.f32 %v4949_v1, %v4933_v25  ;;  %4740 = vmatmul.mubr.msk.bf16.vlgmr.msra.gmra.mxu1 %vm775_vm2, %v3178_v26  ;;  %v4148_v25 = vld [vmem:[%s5890_s3 + $0x18] sm:$0xf] }
 0xae6   :  { %4750 = vmatpush3.bf16.msra.mxu1 %v3380_v3  ;;  %v3159_v6 = vpop.xlane.xlu1 %3158  ;;  %4751 = vmatprep.mubr.msk.bf16.mxu1 %vm4999_vm1, %v4998_v8  ;;  %v3667_v28 = vsel %vm1251_vm3, %v4148_v25, 0 }
 0xae7   :  { %v3179_v7 = vpack.c.bf16 %v3171_v5, %v3171_v5  ;;  %4956 = vrcp.f32 %v3159_v6  ;;  %4761 = vmatprep.subr.bf16.mxu1 %v4998_v8 }
 0xae8   :  { %v4951_v21 = vpop.eup %4950 }
 0xae9   :  { %v3172_v10 = vmul.f32 %v4951_v21, %v4935_v27  ;;  %4746 = vmatmul.mubr.msk.bf16.vlgmr.msra.gmra.mxu0 %vm775_vm2, %v3179_v7 }
 0xaea   :  { %4756 = vmatpush3.bf16.msra.mxu0 %v3426_v9  ;;  %4757 = vmatprep.mubr.msk.bf16.mxu0 %vm4999_vm1, %v4998_v8 }
 0xaeb   :  { %v3180_v29 = vpack.c.bf16 %v3172_v10, %v3172_v10  ;;  %4767 = vmatprep.subr.bf16.mxu0 %v4998_v8 }
 0xaec   :  { %v4953_v12 = vpop.eup %4952 }
 0xaed   :  { %v3173_v54 = vmul.f32 %v4953_v12, %v5751_v30  ;;  %4752 = vmatmul.mubr.msk.bf16.vlgmr.msra.gmra.mxu1 %vm775_vm2, %v3180_v29 }
 0xaee   :  { %4762 = vmatpush3.bf16.msra.mxu1 %v3472_v2  ;;  %4763 = vmatprep.mubr.msk.bf16.mxu1 %vm4999_vm1, %v4998_v8 }
 0xaef   :  { %v3181_v51 = vpack.c.bf16 %v3173_v54, %v3173_v54  ;;  %4773 = vmatprep.subr.bf16.mxu1 %v4998_v8 }
 0xaf0   :  { %v4955_v4 = vpop.eup %4954 }
 0xaf1   :  { %v3174_v14 = vmul.f32 %v4955_v4, %v5755_v32  ;;  %4758 = vmatmul.mubr.msk.bf16.vlgmr.msra.gmra.mxu0 %vm775_vm2, %v3181_v51 }
 0xaf2   :  { %4768 = vmatpush3.bf16.msra.mxu0 %v3518_v13  ;;  %4769 = vmatprep.mubr.msk.bf16.mxu0 %vm4999_vm1, %v4998_v8 }
 0xaf3   :  { %v3182_v44 = vpack.c.bf16 %v3174_v14, %v3174_v14  ;;  %4779 = vmatprep.subr.bf16.mxu0 %v4998_v8 }
 0xaf4   :  { %v4957_v60 = vpop.eup %4956 }
 0xaf5   :  { %v3175_v15 = vmul.f32 %v4957_v60, %v5759_v35  ;;  %4764 = vmatmul.mubr.msk.bf16.vlgmr.msra.gmra.mxu1 %vm775_vm2, %v3182_v44 }
 0xaf6   :  { %4775 = vmatprep.mubr.msk.bf16.mxu1 %vm4999_vm1, %v4998_v8  ;;  %4774 = vmatpush3.bf16.msra.mxu1 %v3573_v19 }
 0xaf7   :  { %v3183_v16 = vpack.c.bf16 %v3175_v15, %v3175_v15  ;;  %4785 = vmatprep.subr.bf16.mxu1 %v4998_v8 }
 0xaf9   :  { %4770 = vmatmul.mubr.msk.bf16.vlgmr.msra.gmra.mxu0 %vm775_vm2, %v3183_v16 }
 0xafa   :  { %4781 = vmatprep.mubr.msk.bf16.mxu0 %vm4999_vm1, %v4998_v8  ;;  %4780 = vmatpush3.bf16.msra.mxu0 %v3620_v11 }
 0xafb   :  { %4791 = vmatprep.subr.bf16.mxu0 %v4998_v8 }
 0xb95   :  { %v3232_v17 = vpop.f32.mrf.mxu1 }
 0xb97   :  { %v4729_v23 = vpop.f32.mrf.mxu1 }
 0xb99   :  { %v3235_v24 = vpop.f32.mrf.mxu1  ;;  %v3278_v22 = vpop.f32.mrf.mxu0 }
 0xb9a   :  { %v3560_v27 = vpack.c.bf16 %v3278_v22, %v3232_v17 }
 0xb9b   :  { %v4730_v30 = vpop.f32.mrf.mxu1  ;;  %v4735_v31 = vpop.f32.mrf.mxu0 }
 0xb9c   :  { %4776 = vmatmul.mubr.msk.bf16.vlgmr.msra.gmra.mxu1 %vm775_vm2, %v3560_v27  ;;  %v4876_v30 = vld [vmem:[%s5891_s4 + $0x18] sm:$0xff]   ;;  %v4879_v31 = vld [vmem:[%s5892_s5 + $0x30] sm:$0xff]  }
 0xb9d   :  { %v3281_v32 = vpop.f32.mrf.mxu0  ;;  %4786 = vmatpush3.bf16.msra.mxu1 %v3667_v28  ;;  %4787 = vmatprep.mubr.msk.bf16.mxu1 %vm4999_vm1, %v4998_v8 }
 0xb9e   :  { %4797 = vmatprep.subr.bf16.mxu1 %v4998_v8 }
 0xb9f   :  { %v4736_v34 = vpop.f32.mrf.mxu0 }
 0xba5   :  { %v3324_v35 = vpop.f32.mrf.mxu1 }
 0xba7   :  { %v4741_v37 = vpop.f32.mrf.mxu1 }
 0xba9   :  { %v3327_v40 = vpop.f32.mrf.mxu1  ;;  %v3370_v41 = vpop.f32.mrf.mxu0 }
 0xbaa   :  { %v3561_v45 = vpack.c.bf16 %v3370_v41, %v3324_v35 }
 0xbab   :  { %v4742_v46 = vpop.f32.mrf.mxu1  ;;  %v4747_v48 = vpop.f32.mrf.mxu0 }
 0xbac   :  { %4782 = vmatmul.mubr.msk.bf16.vlgmr.msra.gmra.mxu0 %vm775_vm2, %v3561_v45  ;;  %v4155_v46 = vld [vmem:[%s5894_s7 + $0x1] ss:$0 sm:$0xff] }
 0xbad   :  { %v3373_v39 = vpop.f32.mrf.mxu0  ;;  %v3416_v47 = vpop.f32.mrf.mxu1  ;;  %4792 = vmatpush3.bf16.msra.mxu0 %v3714_v42  ;;  %4793 = vmatprep.mubr.msk.bf16.mxu0 %vm4999_vm1, %v4998_v8 }
 0xbae   :  { %4805 = vmatprep.subr.bf16.mxu0 %v4998_v8 }
 0xbaf   :  { %v4748_v50 = vpop.f32.mrf.mxu0  ;;  %v4753_v52 = vpop.f32.mrf.mxu1 }
 0xbb0   :  { %v4880_v52 = vld [vmem:[%s5892_s5 + $0x28] sm:$0xff]  }
 0xbb1   :  { %v3419_v53 = vpop.f32.mrf.mxu1  ;;  %v3462_v36 = vpop.f32.mrf.mxu0 }
 0xbb2   :  { %v3562_v55 = vpack.c.bf16 %v3462_v36, %v3416_v47  ;;  %v4881_v53 = vld [vmem:[%s5892_s5 + $0x20] sm:$0xff]  }
 0xbb3   :  { %v4754_v56 = vpop.f32.mrf.mxu1  ;;  %v4759_v43 = vpop.f32.mrf.mxu0 }
 0xbb4   :  { %4788 = vmatmul.mubr.msk.bf16.vlgmr.msra.gmra.mxu1 %vm775_vm2, %v3562_v55 }
 0xbb5   :  { %v3465_v57 = vpop.f32.mrf.mxu0  ;;  %v3508_v59 = vpop.f32.mrf.mxu1  ;;  %4801 = vmatprep.mubr.msk.bf16.mxu1 %vm4999_vm1, %v4998_v8  ;;  %4798 = vmatpush3.bf16.msra.mxu1 %v4876_v30 }
 0xbb6   :  { %4799 = vmatprep.subr.bf16.mxu1 %v4998_v8 }
 0xbb7   :  { %v4760_v62 = vpop.f32.mrf.mxu0  ;;  %v4765_v0 = vpop.f32.mrf.mxu1 }
 0xbb9   :  { %v3511_v26 = vpop.f32.mrf.mxu1  ;;  %v3554_v1 = vpop.f32.mrf.mxu0 }
 0xbba   :  { %v3563_v3 = vpack.c.bf16 %v3554_v1, %v3508_v59 }
 0xbbb   :  { %v4766_v33 = vpop.f32.mrf.mxu1  ;;  %v4771_v5 = vpop.f32.mrf.mxu0 }
 0xbbc   :  { %4794 = vmatmul.mubr.msk.bf16.vlgmr.msra.gmra.mxu0 %vm775_vm2, %v3563_v3 }
 0xbbd   :  { %v3557_v6 = vpop.f32.mrf.mxu0  ;;  %4813 = vmatprep.mubr.msk.bf16.mxu0 %vm4999_vm1, %v4998_v8 }
 0xbbf   :  { %v4772_v7 = vpop.f32.mrf.mxu0 }
 0xc5c   :  { %v3609_v21 = vpop.f32.mrf.mxu1 }
 0xc5e   :  { %v4777_v9 = vpop.f32.mrf.mxu1 }
 0xc60   :  { %v3612_v49 = vpop.f32.mrf.mxu1 }
 0xc62   :  { %v4778_v10 = vpop.f32.mrf.mxu1 }
 0xc6c   :  { %v3656_v29 = vpop.f32.mrf.mxu0 }
 0xc6d   :  { %v3757_v13 = vadd.f32 %v3656_v29, %v3609_v21 }
 0xc6e   :  { %v4783_v12 = vpop.f32.mrf.mxu0 }
 0xc70   :  { %v3659_v2 = vpop.f32.mrf.mxu0 }
 0xc71   :  { %v3758_v15 = vadd.f32 %v3659_v2, %v3612_v49 }
 0xc72   :  { %v4784_v61 = vpop.f32.mrf.mxu0 }
 0xc74   :  { %v3703_v54 = vpop.f32.mrf.mxu1 }
 0xc75   :  { %v3759_v44 = vadd.f32 %v3757_v13, %v3703_v54  ;;  %v4176_v54 = vld [vmem:[%s5895_s8] ss:$0 sm:$0xff] }
 0xc76   :  { %v4789_v51 = vpop.f32.mrf.mxu1 }
 0xc78   :  { %v3706_v4 = vpop.f32.mrf.mxu1 }
 0xc79   :  { %v3760_v19 = vadd.f32 %v3758_v15, %v3706_v4 }
 0xc7a   :  { %v4790_v14 = vpop.f32.mrf.mxu1 }
 0xc7c   :  { %v3750_v60 = vpop.f32.mrf.mxu0 }
 0xc7d   :  { %v3761_v16 = vadd.f32 %v3759_v44, %v3750_v60 }
 0xc7e   :  { %v4795_v18 = vpop.f32.mrf.mxu0 }
 0xc7f   :  { %v3763_v20 = vadd.f32 %v3761_v16, %v5473_v58  ;;  %v4877_v58 = vld [vmem:[%s5891_s4 + $0x10] sm:$0xff]  }
 0xc80   :  { %v3753_v11 = vpop.f32.mrf.mxu0  ;;  %4800 = vmatpush3.bf16.msra.mxu1 %v4877_v58 }
 0xc81   :  { %v3762_v17 = vadd.f32 %v3760_v19, %v3753_v11  ;;  %v3767_v23 = vmul.f32 %v3763_v20, %v3763_v20 }
 0xc82   :  { %v4796_v25 = vpop.f32.mrf.mxu0 }
 0xc83   :  { %v3764_v24 = vadd.f32 %v3762_v17, %v5477_v63  ;;  %v3769_v22 = vsel %vm47_vm0, %v3767_v23, 0.0  ;;  %v4878_v63 = vld [vmem:[%s5892_s5 + $0x38] sm:$0xff]  }
 0xc84   :  { %3770 = vadd.xlane.f32.xlu0 %v3769_v22  ;;  %4806 = vmatpush3.bf16.msra.mxu0 %v4878_v63 }
 0xc85   :  { %v3768_v27 = vmul.f32 %v3764_v24, %v3764_v24  ;;  %4807 = vmatprep.subr.bf16.mxu0 %v4998_v8 }
 0xc87   :  { %v3772_v28 = vsel %vm47_vm0, %v3768_v27, 0.0 }
 0xc88   :  { %3773 = vadd.xlane.f32.xlu1 %v3772_v28  ;;  %4808 = vmatpush3.bf16.msra.mxu0 %v4879_v31 }
 0xc89   :  { %4809 = vmatprep.subr.bf16.mxu0 %v4998_v8 }
 0xc8c   :  { %4810 = vmatpush3.bf16.msra.mxu0 %v4880_v52 }
 0xc8d   :  { %4811 = vmatprep.subr.bf16.mxu0 %v4998_v8 }
 0xc90   :  { %4812 = vmatpush3.bf16.msra.mxu0 %v4881_v53 }
 0xd0d   :  { %v3771_v32 = vpop.xlane.xlu0 %3770 }
 0xd0e   :  { %v3775_v34 = vmul.f32 0.03125, %v3771_v32 }
 0xd10   :  { %v3777_v35 = vadd.f32 1e-06, %v3775_v34 }
 0xd11   :  { %v3774_v37 = vpop.xlane.xlu1 %3773 }
 0xd12   :  { %4958 = vrsqrt.f32 %v3777_v35  ;;  %v3776_v38 = vmul.f32 0.03125, %v3774_v37 }
 0xd14   :  { %v3778_v40 = vadd.f32 1e-06, %v3776_v38 }
 0xd16   :  { %4960 = vrsqrt.f32 %v3778_v40 }
 0xd1f   :  { %v4959_v41 = vpop.eup %4958 }
 0xd20   :  { %v3781_v45 = vmul.f32 %v4959_v41, %v3763_v20 }
 0xd22   :  { %v3789_v39 = vmul.f32 %v4155_v46, %v3781_v45 }
 0xd23   :  { %v4961_v42 = vpop.eup %4960 }
 0xd24   :  { %v3782_v48 = vmul.f32 %v4961_v42, %v3764_v24 }
 0xd26   :  { %v3790_v47 = vmul.f32 %v4155_v46, %v3782_v48 }
 0xd28   :  { %v3791_v50 = vpack.c.bf16 %v3790_v47, %v3789_v39 }
 0xd2a   :  { %4802 = vmatmul.mubr.msk.bf16.vlgmr.msra.gmra.mxu1 %vm47_vm0, %v3791_v50 }
 0xdea   :  { %v3846_v36 = vpop.f32.mrf.mxu1 }
 0xdeb   :  { %v3853_v43 = vmax.f32 %v3846_v36, 0.0 }
 0xdec   :  { %v4803_v55 = vpop.f32.mrf.mxu1 }
 0xdee   :  { %v3849_v56 = vpop.f32.mrf.mxu1 }
 0xdef   :  { %v3854_v57 = vmax.f32 %v3849_v56, 0.0 }
 0xdf0   :  { %v4804_v59 = vpop.f32.mrf.mxu1 }
 0xdf1   :  { %v3855_v62 = vpack.c.bf16 %v3854_v57, %v3853_v43 }
 0xdf3   :  { %4814 = vmatmul.mubr.msk.bf16.vlgmr.msra.gmra.mxu0 %vm1942_vm4, %v3855_v62 }
 0xeb3   :  { %v3926_v0 = vpop.f32.mrf.mxu0 }
 0xeb4   :  { %v3933_v26 = vadd.f32 %v3926_v0, %v3763_v20 }
 0xeb5   :  { %v4815_v1 = vpop.f32.mrf.mxu0 }
 0xeb6   :  { %v3936_v3 = vmul.f32 %v3933_v26, %v3933_v26 }
 0xeb7   :  { %v3929_v33 = vpop.f32.mrf.mxu0 }
 0xeb8   :  { %v3934_v8 = vadd.f32 %v3929_v33, %v3764_v24  ;;  %v3938_v5 = vsel %vm47_vm0, %v3936_v3, 0.0 }
 0xeb9   :  { %3939 = vadd.xlane.f32.xlu0 %v3938_v5  ;;  %v4816_v6 = vpop.f32.mrf.mxu0 }
 0xeba   :  { %v3937_v7 = vmul.f32 %v3934_v8, %v3934_v8 }
 0xebc   :  { %v3941_v21 = vsel %vm47_vm0, %v3937_v7, 0.0 }
 0xebd   :  { %3942 = vadd.xlane.f32.xlu1 %v3941_v21 }
 0xf42   :  { %v3940_v9 = vpop.xlane.xlu0 %3939 }
 0xf43   :  { %v3944_v49 = vmul.f32 0.03125, %v3940_v9 }
 0xf45   :  { %v3946_v10 = vadd.f32 1e-06, %v3944_v49 }
 0xf46   :  { %v3943_v29 = vpop.xlane.xlu1 %3942 }
 0xf47   :  { %4962 = vrsqrt.f32 %v3946_v10  ;;  %v3945_v12 = vmul.f32 0.03125, %v3943_v29 }
 0xf49   :  { %v3947_v2 = vadd.f32 1e-06, %v3945_v12 }
 0xf4b   :  { %4964 = vrsqrt.f32 %v3947_v2 }
 0xf54   :  { %v4963_v61 = vpop.eup %4962 }
 0xf55   :  { %v3950_v51 = vmul.f32 %v4963_v61, %v3933_v26 }
 0xf57   :  { %v3958_v4 = vmul.f32 %v4176_v54, %v3950_v51 }
 0xf58   :  { %v4965_v13 = vpop.eup %4964 }
 0xf59   :  { %v3951_v14 = vmul.f32 %v4965_v13, %v3934_v8  ;;  %3960 = vst.msk [vmem:[#allocation2] sm:$0xff] %vm47_vm0, %v3958_v4 }
 0xf5b   :  { %v3959_v44 = vmul.f32 %v4176_v54, %v3951_v14 }
 0xf5d   :  { %3961 = vst.msk [vmem:[#allocation2 + $0x8] sm:$0xff] %vm47_vm0, %v3959_v44 }
 0xf5e   :  { %4987 = shalt.err (!%p4984_p4)
}
 0xf5f   :  { %s5001_s8 = smov 128   ;;  %s5002_s14 = smov 8  }
 0xf60   :  { %3973 = dma.vmem_to_hbm [thread:$0]  %s3968_s12, 256, %s5896_s9, [#allocation3], %s5001_s8, %s5001_s8, %s5002_s14  }
 0xf61   :  { %4996 = dma.done.wait [#allocation3], 256  }
 0xf62   :  { %4997 = vsyncadd [#allocation3], 4294967040 }
 0xf63   :  { %3977 = vsyncpa [#allocation3], 1 }

</bundles_post_ra>
